<compile_context>
chip_gen: v6e
topology: v6e:2x2x1
jax: 0.10.0
libtpu: 0.0.40
codegen_flags: <defaults>
</compile_context>

<pallas_src>
import jax
import jax.numpy as jnp
from jax.experimental import pallas as pl
from jax.experimental.pallas import tpu as pltpu

# Hyperparameters (num_ops / max_bitwidth / max_num_params are module-level
# globals not shown in the snippet; small synthetic values chosen here).
EMB = 128
NUM_LAYERS = 3
NUM_OPS = 16
MAX_BITWIDTH = 32
MAX_NUM_PARAMS = 2
NEG_SLOPE = 0.01  # nn.LeakyReLU default negative_slope


def _leaky(x):
    return jnp.where(x > 0, x, NEG_SLOPE * x)


def sema_emb_kernel(
    xcat_ref,    # (N, EMB*(1+P))     bf16  concatenated [op_emb, param_embs...]
    abig_ref,    # (2N, 2N)           bf16  block-diag [[A,0],[0,Ainv]]
    xw1_ref,     # (EMB*(1+P), EMB)   bf16  OpEmb mlp layer 1
    xw2_ref,     # (EMB, EMB)         bf16  OpEmb mlp layer 2
    ginw_ref,    # (3, EMB, EMB)      bf16  GIN apply_func weights
    mw1_ref,     # (2, 3*EMB, EMB)    bf16  [mlp.0, mlp_inv.0]
    mw2_ref,     # (2, EMB, EMB)      bf16  [mlp.2, mlp_inv.2]
    cw_ref,      # (2*EMB, EMB)       bf16  combine
    bias_ref,    # (10, EMB)          f32   all biases, see order in wrapper
    out_g_ref,       # (1, EMB) f32
    out_nodes_ref,   # (N, EMB) f32
):
    n = xcat_ref.shape[0]
    bf16 = jnp.bfloat16

    def dot(a, b):
        # bf16 operands, f32 accumulation on the MXU.
        return jnp.dot(a.astype(bf16), b.astype(bf16),
                       preferred_element_type=jnp.float32)

    def bias(i):  # static row slice -> (1, EMB) f32
        return bias_ref[i:i + 1, :]

    # ---- OpEmb MLP (states and states_inv start identical: same weights/inputs) ----
    h = _leaky(dot(xcat_ref[...], xw1_ref[...]) + bias(0))
    states0 = dot(h, xw2_ref[...]) + bias(1)                      # (N, EMB) f32

    # ---- Fused GIN stacks: rows [0:N] = graph g, rows [N:2N] = graph g_inv ----
    abig = abig_ref[...]                                          # (2N, 2N) bf16
    s = jnp.concatenate([states0, states0], axis=0)               # (2N, EMB)
    conv_sums = []
    for l in range(NUM_LAYERS):
        agg = dot(abig, s)                     # block-diag => [A@s_fwd ; Ainv@s_inv]
        s = _leaky(dot(s + agg, ginw_ref[l]) + bias(2 + l))       # (2N, EMB)
        conv_sums.append(jnp.sum(s[:n], axis=0, keepdims=True))   # (1, EMB)

    states = s[:n]                                                # final forward chain
    states_inv = s[n:]                                            # final inverse chain

    cat_fwd = jnp.concatenate(conv_sums, axis=1)                  # (1, 3*EMB)
    # Original module appends states.sum(dim=0) (final *forward* states) in the
    # second loop -> three identical copies of the last forward layer sum.
    cat_inv = jnp.concatenate([conv_sums[-1]] * NUM_LAYERS, axis=1)

    g_emb = dot(_leaky(dot(cat_fwd, mw1_ref[0]) + bias(5)), mw2_ref[0]) + bias(6)
    g_inv_emb = dot(_leaky(dot(cat_inv, mw1_ref[1]) + bias(7)), mw2_ref[1]) + bias(8)

    # ---- single fused `combine` matmul for graph-level + node-level outputs ----
    comb_in = jnp.concatenate([
        jnp.concatenate([g_emb, g_inv_emb], axis=1),              # (1, 2*EMB)
        jnp.concatenate([states, states_inv], axis=1),            # (N, 2*EMB)
    ], axis=0)                                                    # (N+1, 2*EMB)
    comb = dot(comb_in, cw_ref[...]) + bias(9)                    # (N+1, EMB) f32

    out_g_ref[...] = comb[:1]
    out_nodes_ref[...] = comb[1:]


def sema_emb_forward(params, a_norm, ainv_norm, ops, op_params):
    """ops: (N,) int32; op_params: list of MAX_NUM_PARAMS (N,) int32 arrays."""
    n = a_norm.shape[0]
    bf16 = jnp.bfloat16

    # Embedding lookups (plain-JAX glue).
    op_e = params["op_embs"][ops]                                 # (N, EMB)
    p_es = [params["param_embs"][p] for p in op_params]
    xcat = jnp.concatenate([op_e] + p_es, axis=1).astype(bf16)    # (N, EMB*(1+P))

    # Block-diagonal adjacency so both GIN chains share one aggregation matmul.
    z = jnp.zeros((n, n), jnp.float32)
    a_big = jnp.concatenate(
        [jnp.concatenate([a_norm, z], axis=1),
         jnp.concatenate([z, ainv_norm], axis=1)], axis=0).astype(bf16)   # (2N, 2N)

    # Pack parameters: fewer VMEM inputs / DMA descriptors, bf16 matmul operands.
    xw1 = params["w1"].astype(bf16)
    xw2 = params["w2"].astype(bf16)
    ginw = jnp.stack([params["g0w"], params["g1w"], params["g2w"]]).astype(bf16)
    mw1 = jnp.stack([params["m1w"], params["i1w"]]).astype(bf16)
    mw2 = jnp.stack([params["m2w"], params["i2w"]]).astype(bf16)
    cw = params["cw"].astype(bf16)
    biases = jnp.concatenate([
        params["b1"], params["b2"],                     # 0,1  OpEmb mlp
        params["g0b"], params["g1b"], params["g2b"],    # 2,3,4 GIN apply_funcs
        params["m1b"], params["m2b"],                   # 5,6  mlp
        params["i1b"], params["i2b"],                   # 7,8  mlp_inv
        params["cb"],                                   # 9    combine
    ], axis=0).astype(jnp.float32)                      # (10, EMB)

    inputs = [xcat, a_big, xw1, xw2, ginw, mw1, mw2, cw, biases]
    vmem = pl.BlockSpec(memory_space=pltpu.MemorySpace.VMEM)
    out_shapes = (
        jax.ShapeDtypeStruct((1, EMB), jnp.float32),    # graph-level embedding
        jax.ShapeDtypeStruct((n, EMB), jnp.float32),    # per-node combined states
    )
    # TODO(synk): for large N (or batches of graphs) add a grid over destination
    # row tiles of a_big (BlockSpec (tm, 2N)) marked "parallel" so v7x's second
    # TensorCore is used and VMEM stays bounded; gridless whole-resident is the
    # right shape for the tiny single-graph case exercised here.
    return pl.pallas_call(
        sema_emb_kernel,
        out_shape=out_shapes,
        in_specs=[vmem] * len(inputs),
        out_specs=(vmem, vmem),
        compiler_params=pltpu.CompilerParams(
            vmem_limit_bytes=48 * 1024 * 1024),  # headroom, safe on v5e/v6e/v7x
    )(*inputs)


def init_params(key):
    ks = jax.random.split(key, 24)

    def w(k, shape, scale=0.05):
        return (scale * jax.random.normal(k, shape)).astype(jnp.float32)

    cat_in = EMB * (1 + MAX_NUM_PARAMS)
    p = {
        "op_embs":    w(ks[0], (NUM_OPS, EMB)),
        "param_embs": w(ks[1], (MAX_BITWIDTH, EMB)),
        # OpEmb.mlp
        "w1": w(ks[2], (cat_in, EMB)), "b1": w(ks[3], (1, EMB)),
        "w2": w(ks[4], (EMB, EMB)),    "b2": w(ks[5], (1, EMB)),
        # GINConv apply_funcs (Linear + LeakyReLU) x 3
        "g0w": w(ks[6], (EMB, EMB)),  "g0b": w(ks[7], (1, EMB)),
        "g1w": w(ks[8], (EMB, EMB)),  "g1b": w(ks[9], (1, EMB)),
        "g2w": w(ks[10], (EMB, EMB)), "g2b": w(ks[11], (1, EMB)),
        # mlp
        "m1w": w(ks[12], (EMB * NUM_LAYERS, EMB)), "m1b": w(ks[13], (1, EMB)),
        "m2w": w(ks[14], (EMB, EMB)),              "m2b": w(ks[15], (1, EMB)),
        # mlp_inv
        "i1w": w(ks[16], (EMB * NUM_LAYERS, EMB)), "i1b": w(ks[17], (1, EMB)),
        "i2w": w(ks[18], (EMB, EMB)),              "i2b": w(ks[19], (1, EMB)),
        # combine
        "cw": w(ks[20], (EMB * 2, EMB)), "cb": w(ks[21], (1, EMB)),
    }
    # TODO(synk): self.edge_func is defined in __init__ but never used in
    # forward(); intentionally not instantiated here.
    return p


if __name__ == "__main__":
    key = jax.random.PRNGKey(0)
    kp, ko, kp0, kp1, kg = jax.random.split(key, 5)

    N = 8  # number of graph nodes
    params = init_params(kp)

    ops = jax.random.randint(ko, (N,), 0, NUM_OPS, dtype=jnp.int32)
    op_params = [
        jax.random.randint(kp0, (N,), 0, MAX_BITWIDTH, dtype=jnp.int32),
        jax.random.randint(kp1, (N,), 0, MAX_BITWIDTH, dtype=jnp.int32),
    ]

    # Dense adjacency for g (A[dst, src] = 1 if edge src->dst); g_inv = reversed graph.
    adj = (jax.random.uniform(kg, (N, N)) < 0.3).astype(jnp.float32)
    deg = adj.sum(axis=1, keepdims=True)
    a_norm = adj / jnp.maximum(deg, 1.0)                 # 'mean' aggregator
    adj_inv = adj.T
    ainv_norm = adj_inv / jnp.maximum(adj_inv.sum(axis=1, keepdims=True), 1.0)

    g_out, node_out = sema_emb_forward(params, a_norm, ainv_norm, ops, op_params)
    jax.block_until_ready((g_out, node_out))
    assert g_out.shape == (1, EMB) and node_out.shape == (N, EMB)
    assert bool(jnp.all(jnp.isfinite(g_out))) and bool(jnp.all(jnp.isfinite(node_out)))
    print("KERNEL_OK")
</pallas_src>

<mosaic_0001>
module attributes {stable_mosaic.version = 11 : i64} {
  func.func @sema_emb_kernel(%arg0: memref<8x384xbf16, #tpu.memory_space<vmem>>, %arg1: memref<16x16xbf16, #tpu.memory_space<vmem>>, %arg2: memref<384x128xbf16, #tpu.memory_space<vmem>>, %arg3: memref<128x128xbf16, #tpu.memory_space<vmem>>, %arg4: memref<3x128x128xbf16, #tpu.memory_space<vmem>>, %arg5: memref<2x384x128xbf16, #tpu.memory_space<vmem>>, %arg6: memref<2x128x128xbf16, #tpu.memory_space<vmem>>, %arg7: memref<256x128xbf16, #tpu.memory_space<vmem>>, %arg8: memref<10x128xf32, #tpu.memory_space<vmem>>, %arg9: memref<1x128xf32, #tpu.memory_space<vmem>>, %arg10: memref<8x128xf32, #tpu.memory_space<vmem>>) attributes {dimension_semantics = [], scalar_prefetch = 0 : i64, scratch_operands = 0 : i64, tpu.core_type = #tpu.core_type<tc>} {
    %c0 = arith.constant 0 : index
    %c0_0 = arith.constant 0 : index
    %0 = vector.load %arg0[%c0, %c0_0] : memref<8x384xbf16, #tpu.memory_space<vmem>>, vector<8x384xbf16>
    %c0_1 = arith.constant 0 : index
    %c0_2 = arith.constant 0 : index
    %1 = vector.load %arg2[%c0_1, %c0_2] : memref<384x128xbf16, #tpu.memory_space<vmem>>, vector<384x128xbf16>
    %cst = arith.constant dense<0.000000e+00> : vector<8x128xf32>
    %2 = tpu.matmul %0, %1, %cst {dimension_numbers = #tpu.dot_dimension_numbers<[1], [0], [0], [1], [0, 0, 1, 1], [], []>} : vector<8x384xbf16>, vector<384x128xbf16>, vector<8x128xf32> -> vector<8x128xf32>
    %c0_3 = arith.constant 0 : index
    %c0_4 = arith.constant 0 : index
    %3 = vector.load %arg8[%c0_3, %c0_4] : memref<10x128xf32, #tpu.memory_space<vmem>>, vector<1x128xf32>
    %4 = vector.broadcast %3 : vector<1x128xf32> to vector<8x128xf32>
    %5 = arith.addf %2, %4 : vector<8x128xf32>
    %cst_5 = arith.constant 0.000000e+00 : f32
    %6 = vector.broadcast %cst_5 : f32 to vector<8x128xf32>
    %7 = arith.cmpf ogt, %5, %6 : vector<8x128xf32>
    %cst_6 = arith.constant 0.00999999977 : f32
    %8 = vector.broadcast %cst_6 : f32 to vector<8x128xf32>
    %9 = arith.mulf %8, %5 : vector<8x128xf32>
    %10 = arith.select %7, %5, %9 : vector<8x128xi1>, vector<8x128xf32>
    %c0_7 = arith.constant 0 : index
    %c0_8 = arith.constant 0 : index
    %11 = vector.load %arg3[%c0_7, %c0_8] : memref<128x128xbf16, #tpu.memory_space<vmem>>, vector<128x128xbf16>
    %12 = arith.truncf %10 : vector<8x128xf32> to vector<8x128xbf16>
    %cst_9 = arith.constant dense<0.000000e+00> : vector<8x128xf32>
    %13 = tpu.matmul %12, %11, %cst_9 {dimension_numbers = #tpu.dot_dimension_numbers<[1], [0], [0], [1], [0, 0, 1, 1], [], []>} : vector<8x128xbf16>, vector<128x128xbf16>, vector<8x128xf32> -> vector<8x128xf32>
    %c1 = arith.constant 1 : index
    %c0_10 = arith.constant 0 : index
    %14 = vector.load %arg8[%c1, %c0_10] : memref<10x128xf32, #tpu.memory_space<vmem>>, vector<1x128xf32>
    %15 = vector.broadcast %14 : vector<1x128xf32> to vector<8x128xf32>
    %16 = arith.addf %13, %15 : vector<8x128xf32>
    %c0_11 = arith.constant 0 : index
    %c0_12 = arith.constant 0 : index
    %17 = vector.load %arg1[%c0_11, %c0_12] : memref<16x16xbf16, #tpu.memory_space<vmem>>, vector<16x16xbf16>
    %18 = tpu.concatenate %16, %16 in 0 : vector<8x128xf32>, vector<8x128xf32> -> vector<16x128xf32>
    %19 = arith.truncf %18 : vector<16x128xf32> to vector<16x128xbf16>
    %cst_13 = arith.constant dense<0.000000e+00> : vector<16x128xf32>
    %20 = tpu.matmul %17, %19, %cst_13 {dimension_numbers = #tpu.dot_dimension_numbers<[1], [0], [0], [1], [0, 0, 1, 1], [], []>} : vector<16x16xbf16>, vector<16x128xbf16>, vector<16x128xf32> -> vector<16x128xf32>
    %21 = arith.addf %18, %20 : vector<16x128xf32>
    %c0_14 = arith.constant 0 : index
    %c0_15 = arith.constant 0 : index
    %c0_16 = arith.constant 0 : index
    %22 = vector.load %arg4[%c0_14, %c0_15, %c0_16] : memref<3x128x128xbf16, #tpu.memory_space<vmem>>, vector<1x128x128xbf16>
    %23 = vector.shape_cast %22 : vector<1x128x128xbf16> to vector<128x128xbf16>
    %24 = arith.truncf %21 : vector<16x128xf32> to vector<16x128xbf16>
    %cst_17 = arith.constant dense<0.000000e+00> : vector<16x128xf32>
    %25 = tpu.matmul %24, %23, %cst_17 {dimension_numbers = #tpu.dot_dimension_numbers<[1], [0], [0], [1], [0, 0, 1, 1], [], []>} : vector<16x128xbf16>, vector<128x128xbf16>, vector<16x128xf32> -> vector<16x128xf32>
    %c2 = arith.constant 2 : index
    %c0_18 = arith.constant 0 : index
    %26 = vector.load %arg8[%c2, %c0_18] : memref<10x128xf32, #tpu.memory_space<vmem>>, vector<1x128xf32>
    %27 = vector.broadcast %26 : vector<1x128xf32> to vector<16x128xf32>
    %28 = arith.addf %25, %27 : vector<16x128xf32>
    %cst_19 = arith.constant 0.000000e+00 : f32
    %29 = vector.broadcast %cst_19 : f32 to vector<16x128xf32>
    %30 = arith.cmpf ogt, %28, %29 : vector<16x128xf32>
    %cst_20 = arith.constant 0.00999999977 : f32
    %31 = vector.broadcast %cst_20 : f32 to vector<16x128xf32>
    %32 = arith.mulf %31, %28 : vector<16x128xf32>
    %33 = arith.select %30, %28, %32 : vector<16x128xi1>, vector<16x128xf32>
    %34 = vector.extract_strided_slice %33 {offsets = [0, 0], sizes = [8, 128], strides = [1, 1]} : vector<16x128xf32> to vector<8x128xf32>
    %cst_21 = arith.constant dense<0.000000e+00> : vector<128xf32>
    %35 = vector.multi_reduction <add>, %34, %cst_21 [0] : vector<8x128xf32> to vector<128xf32>
    %36 = vector.shape_cast %35 : vector<128xf32> to vector<1x128xf32>
    %37 = arith.truncf %33 : vector<16x128xf32> to vector<16x128xbf16>
    %cst_22 = arith.constant dense<0.000000e+00> : vector<16x128xf32>
    %38 = tpu.matmul %17, %37, %cst_22 {dimension_numbers = #tpu.dot_dimension_numbers<[1], [0], [0], [1], [0, 0, 1, 1], [], []>} : vector<16x16xbf16>, vector<16x128xbf16>, vector<16x128xf32> -> vector<16x128xf32>
    %39 = arith.addf %33, %38 : vector<16x128xf32>
    %c1_23 = arith.constant 1 : index
    %c0_24 = arith.constant 0 : index
    %c0_25 = arith.constant 0 : index
    %40 = vector.load %arg4[%c1_23, %c0_24, %c0_25] : memref<3x128x128xbf16, #tpu.memory_space<vmem>>, vector<1x128x128xbf16>
    %41 = vector.shape_cast %40 : vector<1x128x128xbf16> to vector<128x128xbf16>
    %42 = arith.truncf %39 : vector<16x128xf32> to vector<16x128xbf16>
    %cst_26 = arith.constant dense<0.000000e+00> : vector<16x128xf32>
    %43 = tpu.matmul %42, %41, %cst_26 {dimension_numbers = #tpu.dot_dimension_numbers<[1], [0], [0], [1], [0, 0, 1, 1], [], []>} : vector<16x128xbf16>, vector<128x128xbf16>, vector<16x128xf32> -> vector<16x128xf32>
    %c3 = arith.constant 3 : index
    %c0_27 = arith.constant 0 : index
    %44 = vector.load %arg8[%c3, %c0_27] : memref<10x128xf32, #tpu.memory_space<vmem>>, vector<1x128xf32>
    %45 = vector.broadcast %44 : vector<1x128xf32> to vector<16x128xf32>
    %46 = arith.addf %43, %45 : vector<16x128xf32>
    %cst_28 = arith.constant 0.000000e+00 : f32
    %47 = vector.broadcast %cst_28 : f32 to vector<16x128xf32>
    %48 = arith.cmpf ogt, %46, %47 : vector<16x128xf32>
    %cst_29 = arith.constant 0.00999999977 : f32
    %49 = vector.broadcast %cst_29 : f32 to vector<16x128xf32>
    %50 = arith.mulf %49, %46 : vector<16x128xf32>
    %51 = arith.select %48, %46, %50 : vector<16x128xi1>, vector<16x128xf32>
    %52 = vector.extract_strided_slice %51 {offsets = [0, 0], sizes = [8, 128], strides = [1, 1]} : vector<16x128xf32> to vector<8x128xf32>
    %cst_30 = arith.constant dense<0.000000e+00> : vector<128xf32>
    %53 = vector.multi_reduction <add>, %52, %cst_30 [0] : vector<8x128xf32> to vector<128xf32>
    %54 = vector.shape_cast %53 : vector<128xf32> to vector<1x128xf32>
    %55 = arith.truncf %51 : vector<16x128xf32> to vector<16x128xbf16>
    %cst_31 = arith.constant dense<0.000000e+00> : vector<16x128xf32>
    %56 = tpu.matmul %17, %55, %cst_31 {dimension_numbers = #tpu.dot_dimension_numbers<[1], [0], [0], [1], [0, 0, 1, 1], [], []>} : vector<16x16xbf16>, vector<16x128xbf16>, vector<16x128xf32> -> vector<16x128xf32>
    %57 = arith.addf %51, %56 : vector<16x128xf32>
    %c2_32 = arith.constant 2 : index
    %c0_33 = arith.constant 0 : index
    %c0_34 = arith.constant 0 : index
    %58 = vector.load %arg4[%c2_32, %c0_33, %c0_34] : memref<3x128x128xbf16, #tpu.memory_space<vmem>>, vector<1x128x128xbf16>
    %59 = vector.shape_cast %58 : vector<1x128x128xbf16> to vector<128x128xbf16>
    %60 = arith.truncf %57 : vector<16x128xf32> to vector<16x128xbf16>
    %cst_35 = arith.constant dense<0.000000e+00> : vector<16x128xf32>
    %61 = tpu.matmul %60, %59, %cst_35 {dimension_numbers = #tpu.dot_dimension_numbers<[1], [0], [0], [1], [0, 0, 1, 1], [], []>} : vector<16x128xbf16>, vector<128x128xbf16>, vector<16x128xf32> -> vector<16x128xf32>
    %c4 = arith.constant 4 : index
    %c0_36 = arith.constant 0 : index
    %62 = vector.load %arg8[%c4, %c0_36] : memref<10x128xf32, #tpu.memory_space<vmem>>, vector<1x128xf32>
    %63 = vector.broadcast %62 : vector<1x128xf32> to vector<16x128xf32>
    %64 = arith.addf %61, %63 : vector<16x128xf32>
    %cst_37 = arith.constant 0.000000e+00 : f32
    %65 = vector.broadcast %cst_37 : f32 to vector<16x128xf32>
    %66 = arith.cmpf ogt, %64, %65 : vector<16x128xf32>
    %cst_38 = arith.constant 0.00999999977 : f32
    %67 = vector.broadcast %cst_38 : f32 to vector<16x128xf32>
    %68 = arith.mulf %67, %64 : vector<16x128xf32>
    %69 = arith.select %66, %64, %68 : vector<16x128xi1>, vector<16x128xf32>
    %70 = vector.extract_strided_slice %69 {offsets = [0, 0], sizes = [8, 128], strides = [1, 1]} : vector<16x128xf32> to vector<8x128xf32>
    %cst_39 = arith.constant dense<0.000000e+00> : vector<128xf32>
    %71 = vector.multi_reduction <add>, %70, %cst_39 [0] : vector<8x128xf32> to vector<128xf32>
    %72 = vector.shape_cast %71 : vector<128xf32> to vector<1x128xf32>
    %73 = vector.extract_strided_slice %69 {offsets = [0, 0], sizes = [8, 128], strides = [1, 1]} : vector<16x128xf32> to vector<8x128xf32>
    %74 = vector.extract_strided_slice %69 {offsets = [8, 0], sizes = [8, 128], strides = [1, 1]} : vector<16x128xf32> to vector<8x128xf32>
    %75 = tpu.concatenate %36, %54, %72 in 1 : vector<1x128xf32>, vector<1x128xf32>, vector<1x128xf32> -> vector<1x384xf32>
    %76 = tpu.concatenate %72, %72, %72 in 1 : vector<1x128xf32>, vector<1x128xf32>, vector<1x128xf32> -> vector<1x384xf32>
    %c0_40 = arith.constant 0 : index
    %c0_41 = arith.constant 0 : index
    %c0_42 = arith.constant 0 : index
    %77 = vector.load %arg5[%c0_40, %c0_41, %c0_42] : memref<2x384x128xbf16, #tpu.memory_space<vmem>>, vector<1x384x128xbf16>
    %78 = vector.shape_cast %77 : vector<1x384x128xbf16> to vector<384x128xbf16>
    %79 = arith.truncf %75 : vector<1x384xf32> to vector<1x384xbf16>
    %cst_43 = arith.constant dense<0.000000e+00> : vector<1x128xf32>
    %80 = tpu.matmul %79, %78, %cst_43 {dimension_numbers = #tpu.dot_dimension_numbers<[1], [0], [0], [1], [0, 0, 1, 1], [], []>} : vector<1x384xbf16>, vector<384x128xbf16>, vector<1x128xf32> -> vector<1x128xf32>
    %c5 = arith.constant 5 : index
    %c0_44 = arith.constant 0 : index
    %81 = vector.load %arg8[%c5, %c0_44] : memref<10x128xf32, #tpu.memory_space<vmem>>, vector<1x128xf32>
    %82 = arith.addf %80, %81 : vector<1x128xf32>
    %cst_45 = arith.constant 0.000000e+00 : f32
    %83 = vector.broadcast %cst_45 : f32 to vector<1x128xf32>
    %84 = arith.cmpf ogt, %82, %83 : vector<1x128xf32>
    %cst_46 = arith.constant 0.00999999977 : f32
    %85 = vector.broadcast %cst_46 : f32 to vector<1x128xf32>
    %86 = arith.mulf %85, %82 : vector<1x128xf32>
    %87 = arith.select %84, %82, %86 : vector<1x128xi1>, vector<1x128xf32>
    %c0_47 = arith.constant 0 : index
    %c0_48 = arith.constant 0 : index
    %c0_49 = arith.constant 0 : index
    %88 = vector.load %arg6[%c0_47, %c0_48, %c0_49] : memref<2x128x128xbf16, #tpu.memory_space<vmem>>, vector<1x128x128xbf16>
    %89 = vector.shape_cast %88 : vector<1x128x128xbf16> to vector<128x128xbf16>
    %90 = arith.truncf %87 : vector<1x128xf32> to vector<1x128xbf16>
    %cst_50 = arith.constant dense<0.000000e+00> : vector<1x128xf32>
    %91 = tpu.matmul %90, %89, %cst_50 {dimension_numbers = #tpu.dot_dimension_numbers<[1], [0], [0], [1], [0, 0, 1, 1], [], []>} : vector<1x128xbf16>, vector<128x128xbf16>, vector<1x128xf32> -> vector<1x128xf32>
    %c6 = arith.constant 6 : index
    %c0_51 = arith.constant 0 : index
    %92 = vector.load %arg8[%c6, %c0_51] : memref<10x128xf32, #tpu.memory_space<vmem>>, vector<1x128xf32>
    %93 = arith.addf %91, %92 : vector<1x128xf32>
    %c1_52 = arith.constant 1 : index
    %c0_53 = arith.constant 0 : index
    %c0_54 = arith.constant 0 : index
    %94 = vector.load %arg5[%c1_52, %c0_53, %c0_54] : memref<2x384x128xbf16, #tpu.memory_space<vmem>>, vector<1x384x128xbf16>
    %95 = vector.shape_cast %94 : vector<1x384x128xbf16> to vector<384x128xbf16>
    %96 = arith.truncf %76 : vector<1x384xf32> to vector<1x384xbf16>
    %cst_55 = arith.constant dense<0.000000e+00> : vector<1x128xf32>
    %97 = tpu.matmul %96, %95, %cst_55 {dimension_numbers = #tpu.dot_dimension_numbers<[1], [0], [0], [1], [0, 0, 1, 1], [], []>} : vector<1x384xbf16>, vector<384x128xbf16>, vector<1x128xf32> -> vector<1x128xf32>
    %c7 = arith.constant 7 : index
    %c0_56 = arith.constant 0 : index
    %98 = vector.load %arg8[%c7, %c0_56] : memref<10x128xf32, #tpu.memory_space<vmem>>, vector<1x128xf32>
    %99 = arith.addf %97, %98 : vector<1x128xf32>
    %cst_57 = arith.constant 0.000000e+00 : f32
    %100 = vector.broadcast %cst_57 : f32 to vector<1x128xf32>
    %101 = arith.cmpf ogt, %99, %100 : vector<1x128xf32>
    %cst_58 = arith.constant 0.00999999977 : f32
    %102 = vector.broadcast %cst_58 : f32 to vector<1x128xf32>
    %103 = arith.mulf %102, %99 : vector<1x128xf32>
    %104 = arith.select %101, %99, %103 : vector<1x128xi1>, vector<1x128xf32>
    %c1_59 = arith.constant 1 : index
    %c0_60 = arith.constant 0 : index
    %c0_61 = arith.constant 0 : index
    %105 = vector.load %arg6[%c1_59, %c0_60, %c0_61] : memref<2x128x128xbf16, #tpu.memory_space<vmem>>, vector<1x128x128xbf16>
    %106 = vector.shape_cast %105 : vector<1x128x128xbf16> to vector<128x128xbf16>
    %107 = arith.truncf %104 : vector<1x128xf32> to vector<1x128xbf16>
    %cst_62 = arith.constant dense<0.000000e+00> : vector<1x128xf32>
    %108 = tpu.matmul %107, %106, %cst_62 {dimension_numbers = #tpu.dot_dimension_numbers<[1], [0], [0], [1], [0, 0, 1, 1], [], []>} : vector<1x128xbf16>, vector<128x128xbf16>, vector<1x128xf32> -> vector<1x128xf32>
    %c8 = arith.constant 8 : index
    %c0_63 = arith.constant 0 : index
    %109 = vector.load %arg8[%c8, %c0_63] : memref<10x128xf32, #tpu.memory_space<vmem>>, vector<1x128xf32>
    %110 = arith.addf %108, %109 : vector<1x128xf32>
    %111 = tpu.concatenate %93, %110 in 1 : vector<1x128xf32>, vector<1x128xf32> -> vector<1x256xf32>
    %112 = tpu.concatenate %73, %74 in 1 : vector<8x128xf32>, vector<8x128xf32> -> vector<8x256xf32>
    %113 = tpu.concatenate %111, %112 in 0 : vector<1x256xf32>, vector<8x256xf32> -> vector<9x256xf32>
    %c0_64 = arith.constant 0 : index
    %c0_65 = arith.constant 0 : index
    %114 = vector.load %arg7[%c0_64, %c0_65] : memref<256x128xbf16, #tpu.memory_space<vmem>>, vector<256x128xbf16>
    %115 = arith.truncf %113 : vector<9x256xf32> to vector<9x256xbf16>
    %cst_66 = arith.constant dense<0.000000e+00> : vector<9x128xf32>
    %116 = tpu.matmul %115, %114, %cst_66 {dimension_numbers = #tpu.dot_dimension_numbers<[1], [0], [0], [1], [0, 0, 1, 1], [], []>} : vector<9x256xbf16>, vector<256x128xbf16>, vector<9x128xf32> -> vector<9x128xf32>
    %c9 = arith.constant 9 : index
    %c0_67 = arith.constant 0 : index
    %117 = vector.load %arg8[%c9, %c0_67] : memref<10x128xf32, #tpu.memory_space<vmem>>, vector<1x128xf32>
    %118 = vector.broadcast %117 : vector<1x128xf32> to vector<9x128xf32>
    %119 = arith.addf %116, %118 : vector<9x128xf32>
    %120 = vector.extract_strided_slice %119 {offsets = [0, 0], sizes = [1, 128], strides = [1, 1]} : vector<9x128xf32> to vector<1x128xf32>
    %c0_68 = arith.constant 0 : index
    %c0_69 = arith.constant 0 : index
    %121 = vector.load %arg9[%c0_68, %c0_69] : memref<1x128xf32, #tpu.memory_space<vmem>>, vector<1x128xf32>
    tpu.vector_store %arg9[%c0_68, %c0_69], %120 {strides = array<i32>} : memref<1x128xf32, #tpu.memory_space<vmem>>, vector<1x128xf32>,
    %122 = vector.extract_strided_slice %119 {offsets = [1, 0], sizes = [8, 128], strides = [1, 1]} : vector<9x128xf32> to vector<8x128xf32>
    %c0_70 = arith.constant 0 : index
    %c0_71 = arith.constant 0 : index
    %123 = vector.load %arg10[%c0_70, %c0_71] : memref<8x128xf32, #tpu.memory_space<vmem>>, vector<8x128xf32>
    tpu.vector_store %arg10[%c0_70, %c0_71], %122 {strides = array<i32>} : memref<8x128xf32, #tpu.memory_space<vmem>>, vector<8x128xf32>,
    return
  }
}

</mosaic_0001>

<bundles_post_ra>
// kernel: tpu_custom_call.1
= control target key start
LH: loop header
LB: loop body
LE: loop exit
PB: predicated region body
PF: predicated region fallthrough
CT: control target
= control target key end

     0   :  { %16 = vsyncpa [#allocation3], 0  ;;  %s3234_s0 = inlined_call_operand.hbm [shape: bf16[8,384], index: 0, kind: input, shape index: {}]   ;;  %s3235_s1 = inlined_call_operand.hbm [shape: bf16[16,16], index: 1, kind: input, shape index: {}]   ;;  %s3236_s2 = inlined_call_operand.hbm [shape: bf16[384,128], index: 2, kind: input, shape index: {}]   ;;  %s3237_s3 = inlined_call_operand.hbm [shape: bf16[128,128], index: 3, kind: input, shape index: {}]   ;;  %s3238_s4 = inlined_call_operand.hbm [shape: bf16[3,128,128], index: 4, kind: input, shape index: {}]   ;;  %s3239_s5 = inlined_call_operand.hbm [shape: bf16[2,384,128], index: 5, kind: input, shape index: {}]   ;;  %s3240_s6 = inlined_call_operand.hbm [shape: bf16[2,128,128], index: 6, kind: input, shape index: {}]   ;;  %s3241_s7 = inlined_call_operand.hbm [shape: bf16[256,128], index: 7, kind: input, shape index: {}]   ;;  %s3242_s8 = inlined_call_operand.hbm [shape: f32[10,128], index: 8, kind: input, shape index: {}]   ;;  %s3243_s9 = inlined_call_operand.hbm [shape: f32[1,128], index: 9, kind: output, shape index: {0}]   ;;  %s3244_s10 = inlined_call_operand.hbm [shape: f32[8,128], index: 10, kind: output, shape index: {1}]  }
   0x1   :  { %17 = vsyncpa [#allocation6], 0 }
   0x2   :  { %18 = vsyncpa [#allocation9], 0 }
   0x3   :  { %19 = vsyncpa [#allocation12], 0 }
   0x4   :  { %20 = vsyncpa [#allocation15], 0 }
   0x5   :  { %21 = vsyncpa [#allocation4], 0 }
   0x6   :  { %22 = vsyncpa [#allocation19], 0  ;;  %s2977_s13 = smov [#allocation5]  }
   0x7   :  { %s38_s14 = sshll.u32 %s2977_s13, 4  ;;  %s39_s14 = int_to_ptr.vmem [resolvable:$true] %s38_s14 }
   0x8   :  { %s2751_s15 = scalar_lea.vmem %s39_s14, 128  ;;  %p2756_p1 = scmp.lt.s32.totalorder %s39_s14, %s39_s14 }
   0x9   :  { %p2752_p0 = scmp.ne.s32.totalorder %s39_s14, %s2751_s15  ;;  %p2757_p2 = scmp.lt.s32.totalorder %s2751_s15, %s2751_s15 }
   0xb   :  { %p2758_p3 = por %p2757_p2, %p2756_p1 }
   0xd   :  { %p2759_p4 = pnand %p2758_p3, %p2752_p0 }
   0xf   :  { %2762 = shalt.err (!%p2759_p4)
}
  0x10   :  { %s2978_s16 = smov 64   ;;  %s2979_s17 = smov 4  }
  0x11   :  { %44 = dma.hbm_to_vmem [thread:$0]  %s3235_s1, 128, %s39_s14, [#allocation6], %s2978_s16, %s2978_s16, %s2979_s17  }
  0x12   :  { %s2980_s20 = smov [#allocation8]   ;;  %s2981_s22 = smov [#allocation11]  }
  0x13   :  { %s62_s21 = sshll.u32 %s2980_s20, 4  ;;  %s86_s23 = sshll.u32 %s2981_s22, 4  ;;  %s63_s21 = int_to_ptr.vmem [resolvable:$true] %s62_s21  ;;  %s87_s23 = int_to_ptr.vmem [resolvable:$true] %s86_s23 }
  0x14   :  { %s2771_s24 = scalar_lea.vmem %s63_s21, 1024  ;;  %p2776_p6 = scmp.lt.s32.totalorder %s63_s21, %s63_s21 }
  0x15   :  { %p2772_p5 = scmp.ne.s32.totalorder %s63_s21, %s2771_s24  ;;  %p2777_p7 = scmp.lt.s32.totalorder %s2771_s24, %s2771_s24 }
  0x17   :  { %p2778_p8 = por %p2777_p7, %p2776_p6 }
  0x19   :  { %p2779_p9 = pnand %p2778_p8, %p2772_p5 }
  0x1b   :  { %2782 = shalt.err (!%p2779_p9)
}
  0x1c   :  { %68 = dma.hbm_to_vmem [thread:$0]  %s3237_s3, 1024, %s63_s21, [#allocation9], %s2978_s16, %s2978_s16, %s2979_s17  }
  0x1d   :  { %s2791_s1 = scalar_lea.vmem %s87_s23, 6144  ;;  %p2796_p11 = scmp.lt.s32.totalorder %s87_s23, %s87_s23 }
  0x1e   :  { %p2792_p10 = scmp.ne.s32.totalorder %s87_s23, %s2791_s1  ;;  %p2797_p12 = scmp.lt.s32.totalorder %s2791_s1, %s2791_s1 }
  0x20   :  { %p2798_p13 = por %p2797_p12, %p2796_p11 }
  0x22   :  { %p2799_p0 = pnand %p2798_p13, %p2792_p10 }
  0x24   :  { %2802 = shalt.err (!%p2799_p0)
}
  0x25   :  { %92 = dma.hbm_to_vmem [thread:$0]  %s3239_s5, 6144, %s87_s23, [#allocation12], %s2978_s16, %s2978_s16, %s2979_s17  }
  0x26   :  { %s2982_s29 = smov [#allocation14]   ;;  %s2983_s11 = smov [#allocation2]  }
  0x27   :  { %s110_s30 = sshll.u32 %s2982_s29, 4  ;;  %s29_s3 = sshll.u32 %s2983_s11, 4  ;;  %s111_s30 = int_to_ptr.vmem [resolvable:$true] %s110_s30  ;;  %s30_s3 = int_to_ptr.vmem [resolvable:$true] %s29_s3 }
  0x28   :  { %s2811_s12 = scalar_lea.vmem %s111_s30, 2048  ;;  %p2816_p2 = scmp.lt.s32.totalorder %s111_s30, %s111_s30 }
  0x29   :  { %p2812_p1 = scmp.ne.s32.totalorder %s111_s30, %s2811_s12  ;;  %p2817_p3 = scmp.lt.s32.totalorder %s2811_s12, %s2811_s12 }
  0x2b   :  { %p2818_p4 = por %p2817_p3, %p2816_p2 }
  0x2d   :  { %p2819_p5 = pnand %p2818_p4, %p2812_p1 }
  0x2f   :  { %2822 = shalt.err (!%p2819_p5)
}
  0x30   :  { %116 = dma.hbm_to_vmem [thread:$0]  %s3241_s7, 2048, %s111_s30, [#allocation15], %s2978_s16, %s2978_s16, %s2979_s17  }
  0x31   :  { %s2831_s5 = scalar_lea.vmem %s30_s3, 192  ;;  %p2836_p7 = scmp.lt.s32.totalorder %s30_s3, %s30_s3 }
  0x32   :  { %p2832_p6 = scmp.ne.s32.totalorder %s30_s3, %s2831_s5  ;;  %p2837_p8 = scmp.lt.s32.totalorder %s2831_s5, %s2831_s5 }
  0x34   :  { %p2838_p9 = por %p2837_p8, %p2836_p7 }
  0x36   :  { %p2839_p10 = pnand %p2838_p9, %p2832_p6 }
  0x38   :  { %2842 = shalt.err (!%p2839_p10)
}
  0x39   :  { %32 = dma.hbm_to_vmem [thread:$0]  %s3234_s0, 192, %s30_s3, [#allocation3]  }
  0x3a   :  { %s2984_s19 = smov [#allocation7]   ;;  %s2985_s21 = smov [#allocation10]  }
  0x3b   :  { %s50_s20 = sshll.u32 %s2984_s19, 4  ;;  %s74_s22 = sshll.u32 %s2985_s21, 4  ;;  %s51_s20 = int_to_ptr.vmem [resolvable:$true] %s50_s20  ;;  %s75_s22 = int_to_ptr.vmem [resolvable:$true] %s74_s22 }
  0x3c   :  { %s2851_s23 = scalar_lea.vmem %s51_s20, 3072  ;;  %p2856_p12 = scmp.lt.s32.totalorder %s51_s20, %s51_s20 }
  0x3d   :  { %p2852_p11 = scmp.ne.s32.totalorder %s51_s20, %s2851_s23  ;;  %p2857_p13 = scmp.lt.s32.totalorder %s2851_s23, %s2851_s23 }
  0x3f   :  { %p2858_p0 = por %p2857_p13, %p2856_p12 }
  0x41   :  { %p2859_p1 = pnand %p2858_p0, %p2852_p11 }
  0x43   :  { %2862 = shalt.err (!%p2859_p1)
}
  0x44   :  { %56 = dma.hbm_to_vmem [thread:$0]  %s3236_s2, 3072, %s51_s20, [#allocation6], %s2978_s16, %s2978_s16, %s2979_s17  }
  0x45   :  { %s2871_s0 = scalar_lea.vmem %s75_s22, 3072  ;;  %p2876_p3 = scmp.lt.s32.totalorder %s75_s22, %s75_s22 }
  0x46   :  { %p2872_p2 = scmp.ne.s32.totalorder %s75_s22, %s2871_s0  ;;  %p2877_p4 = scmp.lt.s32.totalorder %s2871_s0, %s2871_s0 }
  0x48   :  { %p2878_p5 = por %p2877_p4, %p2876_p3 }
  0x4a   :  { %p2879_p6 = pnand %p2878_p5, %p2872_p2 }
  0x4c   :  { %2882 = shalt.err (!%p2879_p6)
}
  0x4d   :  { %80 = dma.hbm_to_vmem [thread:$0]  %s3238_s4, 3072, %s75_s22, [#allocation9], %s2978_s16, %s2978_s16, %s2979_s17  }
  0x4e   :  { %s2986_s1 = smov [#allocation13]   ;;  %s2987_s28 = smov [#allocation16]  }
  0x4f   :  { %s98_s27 = sshll.u32 %s2986_s1, 4  ;;  %s122_s2 = sshll.u32 %s2987_s28, 4  ;;  %s99_s27 = int_to_ptr.vmem [resolvable:$true] %s98_s27  ;;  %s123_s2 = int_to_ptr.vmem [resolvable:$true] %s122_s2 }
  0x50   :  { %s2891_s29 = scalar_lea.vmem %s99_s27, 2048  ;;  %p2896_p8 = scmp.lt.s32.totalorder %s99_s27, %s99_s27 }
  0x51   :  { %p2892_p7 = scmp.ne.s32.totalorder %s99_s27, %s2891_s29  ;;  %p2897_p9 = scmp.lt.s32.totalorder %s2891_s29, %s2891_s29 }
  0x53   :  { %p2898_p10 = por %p2897_p9, %p2896_p8 }
  0x55   :  { %p2899_p11 = pnand %p2898_p10, %p2892_p7 }
  0x57   :  { %2902 = shalt.err (!%p2899_p11)
}
  0x58   :  { %104 = dma.hbm_to_vmem [thread:$0]  %s3240_s6, 2048, %s99_s27, [#allocation12], %s2978_s16, %s2978_s16, %s2979_s17  }
  0x59   :  { %s2911_s4 = scalar_lea.vmem %s123_s2, 256  ;;  %p2916_p13 = scmp.lt.s32.totalorder %s123_s2, %s123_s2 }
  0x5a   :  { %p2912_p12 = scmp.ne.s32.totalorder %s123_s2, %s2911_s4  ;;  %p2917_p0 = scmp.lt.s32.totalorder %s2911_s4, %s2911_s4 }
  0x5c   :  { %p2918_p1 = por %p2917_p0, %p2916_p13 }
  0x5e   :  { %p2919_p2 = pnand %p2918_p1, %p2912_p12 }
  0x60   :  { %2922 = shalt.err (!%p2919_p2)
}
  0x61   :  { %s2988_s3 = smov 128   ;;  %s2989_s12 = smov 8  }
  0x62   :  { %128 = dma.hbm_to_vmem [thread:$0]  %s3242_s8, 256, %s123_s2, [#allocation15], %s2988_s3, %s2988_s3, %s2989_s12  }
  0x63   :  { %2963 = dma.done.wait [#allocation3], 192  }
  0x64   :  { %2964 = vsyncadd [#allocation3], 4294967104 }
  0x65   :  { %2965 = dma.done.wait [#allocation6], 3200  }
  0x66   :  { %2966 = vsyncadd [#allocation6], 4294964096 }
  0x67   :  { %2967 = dma.done.wait [#allocation9], 4096  }
  0x68   :  { %2968 = vsyncadd [#allocation9], 4294963200 }
  0x69   :  { %2969 = dma.done.wait [#allocation12], 8192  }
  0x6a   :  { %2970 = vsyncadd [#allocation12], 4294959104 }
  0x6b   :  { %2971 = dma.done.wait [#allocation15], 2304  }
  0x6c   :  { %2972 = vsyncadd [#allocation15], 4294964992  ;;  %v2990_v0 = vmov 0.0   ;;  %vm2991_vm0 = vmmov 0   ;;  %v2603_v1 = vld [vmem:[#allocation7 + $0x78] sm:$0xff]   ;;  %v2606_v4 = vld [vmem:[#allocation7 + $0x70] sm:$0xff]  }
  0x6d   :  { %2388 = vmatprep.subr.bf16.mxu1 %v2990_v0  ;;  %2404 = vmatprep.mubr.msk.bf16.mxu1 %vm2991_vm0, %v2990_v0  ;;  %v2604_v2 = vld [vmem:[#allocation7 + $0x38] sm:$0xff]   ;;  %v2607_v5 = vld [vmem:[#allocation7 + $0x30] sm:$0xff]   ;;  %v2609_v7 = vld [vmem:[#allocation7 + $0x68] sm:$0xff]   ;;  %vm568_vm2 = vcmask 130048   ;;  %vm1849_vm9 = vcmask 1040384   ;;  %s2992_s6 = smov [#allocation17]  }
  0x6e   :  { %2213 = vmatprep.subr.bf16.mxu0 %v2603_v1  ;;  %v2605_v3 = vld [vmem:[#allocation7 + $0xb8] sm:$0xff]   ;;  %v2608_v6 = vld [vmem:[#allocation7 + $0xb0] sm:$0xff]   ;;  %v2610_v8 = vld [vmem:[#allocation7 + $0x28] sm:$0xff]   ;;  %s2037_s8 = sshll.u32 %s2992_s6, 4  ;;  %s2993_s16 = smov [#allocation18]   ;;  %s2038_s8 = int_to_ptr.vmem [resolvable:$true] %s2037_s8 }
  0x6f   :  { %2214 = vmatpush3.bf16.msra.mxu0 %v2604_v2  ;;  %2389 = vmatpush3.bf16.msra.mxu1 %v2605_v3  ;;  %v2611_v9 = vld [vmem:[#allocation7 + $0xa8] sm:$0xff]   ;;  %v2612_v10 = vld [vmem:[#allocation7 + $0x60] sm:$0xff]   ;;  %v2615_v13 = vld [vmem:[#allocation7 + $0x58] sm:$0xff]   ;;  %s2047_s17 = sshll.u32 %s2993_s16, 4  ;;  %s2923_s5 = scalar_lea.vmem %s2038_s8, 16  ;;  %s2048_s17 = int_to_ptr.vmem [resolvable:$true] %s2047_s17 }
  0x70   :  { %2215 = vmatprep.subr.bf16.mxu0 %v2606_v4  ;;  %2390 = vmatprep.subr.bf16.mxu1 %v2990_v0  ;;  %v2613_v11 = vld [vmem:[#allocation7 + $0x20] sm:$0xff]   ;;  %v2616_v14 = vld [vmem:[#allocation7 + $0x18] sm:$0xff]   ;;  %v2618_v16 = vld [vmem:[#allocation7 + $0x50] sm:$0xff]   ;;  %p2924_p3 = scmp.ne.s32.totalorder %s2038_s8, %s2923_s5  ;;  %s2927_s15 = scalar_lea.vmem %s2038_s8, 32 }
  0x71   :  { %v2614_v12 = vld [vmem:[#allocation7 + $0xa0] sm:$0xff]   ;;  %v2617_v15 = vld [vmem:[#allocation7 + $0x98] sm:$0xff]   ;;  %v2619_v17 = vld [vmem:[#allocation7 + $0x10] sm:$0xff]   ;;  %p2928_p4 = scmp.lt.s32.totalorder %s2038_s8, %s2038_s8  ;;  %p2929_p5 = scmp.lt.s32.totalorder %s2927_s15, %s2923_s5 }
  0x72   :  { %v2620_v18 = vld [vmem:[#allocation7 + $0x90] sm:$0xff]   ;;  %v2621_v19 = vld [vmem:[#allocation7 + $0x48] sm:$0xff]   ;;  %v2624_v22 = vld [vmem:[#allocation7 + $0x40] sm:$0xff]  }
  0x73   :  { %2216 = vmatpush3.bf16.msra.mxu0 %v2607_v5  ;;  %2391 = vmatpush3.bf16.msra.mxu1 %v2608_v6  ;;  %v2622_v20 = vld [vmem:[#allocation7 + $0x8] sm:$0xff]   ;;  %v2625_v25 = vld [vmem:[#allocation7] sm:$0xff]   ;;  %v2629_v27 = vld [vmem:[#allocation2 + $0x8] ss:$0 sps:$4 sm:$0xff]   ;;  %p2930_p6 = por %p2929_p5, %p2928_p4 }
  0x74   :  { %2217 = vmatprep.subr.bf16.mxu0 %v2609_v7  ;;  %2392 = vmatprep.subr.bf16.mxu1 %v2990_v0  ;;  %v2623_v21 = vld [vmem:[#allocation7 + $0x88] sm:$0xff]   ;;  %v2626_v26 = vld [vmem:[#allocation7 + $0x80] sm:$0xff]   ;;  %v2630_v28 = vld [vmem:[#allocation8 + $0x38] sm:$0xff]  }
  0x75   :  { %v157_v23 = vld [vmem:[#allocation2] sm:$0xff]  ;;  %v2633_v32 = vld [vmem:[#allocation8 + $0x20] sm:$0xff]   ;;  %v2634_v33 = vld [vmem:[#allocation8 + $0x18] sm:$0xff]   ;;  %p2931_p7 = pnand %p2930_p6, %p2924_p3 }
  0x76   :  { %v2066_v24 = vcombine.high %v157_v23, %v157_v23  ;;  %v2065_v29 = vcombine.low %v157_v23, %v157_v23  ;;  %v2631_v30 = vld [vmem:[#allocation8 + $0x30] sm:$0xff]   ;;  %v2632_v31 = vld [vmem:[#allocation8 + $0x28] sm:$0xff]   ;;  %v2637_v36 = vld [vmem:[#allocation8] sm:$0xff]  }
  0x77   :  { %2218 = vmatpush3.bf16.msra.mxu0 %v2610_v8  ;;  %2393 = vmatpush3.bf16.msra.mxu1 %v2611_v9  ;;  %v2635_v34 = vld [vmem:[#allocation8 + $0x10] sm:$0xff]   ;;  %v2636_v35 = vld [vmem:[#allocation8 + $0x8] sm:$0xff]   ;;  %v2064_v39 = vld [vmem:[#allocation16] ss:$0 sm:$0xff] }
  0x78   :  { %2219 = vmatprep.subr.bf16.mxu0 %v2612_v10  ;;  %2394 = vmatprep.subr.bf16.mxu1 %v2990_v0  ;;  %v2092_v52 = vld [vmem:[#allocation16 + $0x1] ss:$0 sm:$0xff]  ;;  %v3123_v58 = vld [vmem:[#allocation5] sm:$0xff]   ;;  %v2640_v61 = vld [vmem:[#allocation10 + $0x30] sm:$0xff]  }
  0x79   :  { %399 = vmatprep.mubr.bf16.mxu0 %v2066_v24  ;;  %v2639_v59 = vld [vmem:[#allocation10 + $0x38] sm:$0xff]   ;;  %v2641_v62 = vld [vmem:[#allocation10 + $0x28] sm:$0xff]   ;;  %v2642_v63 = vld [vmem:[#allocation10 + $0x20] sm:$0xff]  }
  0x7a   :  { %v2643_v1 = vld [vmem:[#allocation10 + $0x18] sm:$0xff]   ;;  %v2644_v2 = vld [vmem:[#allocation10 + $0x10] sm:$0xff]   ;;  %v2645_v3 = vld [vmem:[#allocation10 + $0x8] sm:$0xff]  }
  0x7b   :  { %2220 = vmatpush3.bf16.msra.mxu0 %v2613_v11  ;;  %2395 = vmatpush3.bf16.msra.mxu1 %v2614_v12  ;;  %v2646_v4 = vld [vmem:[#allocation10] sm:$0xff]   ;;  %v2647_v12 = vld [vmem:[#allocation10 + $0x78] sm:$0xff]  }
  0x7c   :  { %2221 = vmatprep.subr.bf16.mxu0 %v2615_v13  ;;  %2396 = vmatprep.subr.bf16.mxu1 %v2990_v0  ;;  %v2648_v13 = vld [vmem:[#allocation10 + $0x70] sm:$0xff]  }
  0x7f   :  { %2222 = vmatpush3.bf16.msra.mxu0 %v2616_v14  ;;  %2397 = vmatpush3.bf16.msra.mxu1 %v2617_v15  ;;  %v2649_v14 = vld [vmem:[#allocation10 + $0x68] sm:$0xff]   ;;  %v2650_v15 = vld [vmem:[#allocation10 + $0x60] sm:$0xff]  }
  0x80   :  { %2223 = vmatprep.subr.bf16.mxu0 %v2618_v16  ;;  %2398 = vmatprep.subr.bf16.mxu1 %v2990_v0  ;;  %v2651_v16 = vld [vmem:[#allocation10 + $0x58] sm:$0xff]  }
  0x83   :  { %2224 = vmatpush3.bf16.msra.mxu0 %v2619_v17  ;;  %2399 = vmatpush3.bf16.msra.mxu1 %v2620_v18  ;;  %v2652_v17 = vld [vmem:[#allocation10 + $0x50] sm:$0xff]   ;;  %v2103_v18 = vld [vmem:[#allocation16 + $0x2] ss:$0 sm:$0xff] }
  0x84   :  { %2225 = vmatprep.subr.bf16.mxu0 %v2621_v19  ;;  %2400 = vmatprep.subr.bf16.mxu1 %v2990_v0 }
  0x87   :  { %2226 = vmatpush3.bf16.msra.mxu0 %v2622_v20  ;;  %2401 = vmatpush3.bf16.msra.mxu1 %v2623_v21 }
  0x88   :  { %2227 = vmatprep.subr.bf16.mxu0 %v2624_v22  ;;  %2402 = vmatprep.subr.bf16.mxu1 %v2990_v0 }
  0x8b   :  { %2228 = vmatpush3.bf16.msra.mxu0 %v2625_v25  ;;  %2403 = vmatpush3.bf16.msra.mxu1 %v2626_v26 }
  0x8c   :  { %2408 = vmatprep.subr.bf16.mxu0 %v2990_v0  ;;  %2428 = vmatprep.subr.bf16.mxu1 %v2990_v0 }
  0x8e   :  { %400 = vmatmul.mubr.bf16.vlgmr.msra.gmra.mxu0 %v2065_v29  ;;  %2405 = vmatmul.mubr.bf16.vlgmr.msra.gmra.mxu1 %v2629_v27 }
  0x8f   :  { %2409 = vmatpush3.bf16.msra.mxu0 %v2630_v28  ;;  %2424 = vmatprep.mubr.msk.bf16.mxu0 %vm2991_vm0, %v2990_v0 }
  0x90   :  { %2410 = vmatprep.subr.bf16.mxu0 %v2990_v0  ;;  %2430 = vmatprep.mubr.msk.bf16.mxu1 %vm2991_vm0, %v2990_v0 }
  0x93   :  { %2411 = vmatpush3.bf16.msra.mxu0 %v2631_v30  ;;  %v2653_v30 = vld [vmem:[#allocation10 + $0x48] sm:$0xff]  }
  0x94   :  { %2412 = vmatprep.subr.bf16.mxu0 %v2990_v0 }
  0x97   :  { %2413 = vmatpush3.bf16.msra.mxu0 %v2632_v31  ;;  %v2654_v31 = vld [vmem:[#allocation10 + $0x40] sm:$0xff]  }
  0x98   :  { %2414 = vmatprep.subr.bf16.mxu0 %v2990_v0 }
  0x9b   :  { %2415 = vmatpush3.bf16.msra.mxu0 %v2633_v32  ;;  %v2655_v32 = vld [vmem:[#allocation11 + $0x78] sm:$0xff]  }
  0x9c   :  { %2416 = vmatprep.subr.bf16.mxu0 %v2990_v0 }
  0x9f   :  { %2417 = vmatpush3.bf16.msra.mxu0 %v2634_v33 }
  0xa0   :  { %2418 = vmatprep.subr.bf16.mxu0 %v2990_v0 }
  0xa3   :  { %2419 = vmatpush3.bf16.msra.mxu0 %v2635_v34 }
  0xa4   :  { %2420 = vmatprep.subr.bf16.mxu0 %v2990_v0 }
  0xa7   :  { %2421 = vmatpush3.bf16.msra.mxu0 %v2636_v35 }
  0xa8   :  { %2422 = vmatprep.subr.bf16.mxu0 %v2990_v0 }
  0xab   :  { %2423 = vmatpush3.bf16.msra.mxu0 %v2637_v36 }
  0xac   :  { %2460 = vmatprep.subr.bf16.mxu0 %v2990_v0 }
 0x14e   :  { %v2229_v37 = vpop.f32.mrf.mxu0  ;;  %v441_v38 = vpop.f32.mrf.mxu1 }
 0x150   :  { %v2230_v40 = vpop.f32.mrf.mxu0  ;;  %v2406_v42 = vpop.f32.mrf.mxu1 }
 0x151   :  { %v2231_v41 = vadd.f32 %v2230_v40, %v2229_v37  ;;  %v2658_v42 = vld [vmem:[#allocation11 + $0x30] sm:$0xff]  }
 0x152   :  { %v2232_v43 = vpop.f32.mrf.mxu0  ;;  %v444_v45 = vpop.f32.mrf.mxu1 }
 0x153   :  { %v402_v44 = vadd.f32 %v2231_v41, %v2064_v39  ;;  %v2656_v39 = vld [vmem:[#allocation11 + $0x38] sm:$0xff]   ;;  %v2657_v41 = vld [vmem:[#allocation11 + $0x70] sm:$0xff]   ;;  %v2659_v43 = vld [vmem:[#allocation11 + $0x68] sm:$0xff]  }
 0x154   :  { %v2233_v46 = vpop.f32.mrf.mxu0  ;;  %v2407_v48 = vpop.f32.mrf.mxu1  ;;  %v2661_v45 = vld [vmem:[#allocation11 + $0x60] sm:$0xff]  }
 0x155   :  { %v442_v47 = vadd.f32 %v441_v38, %v402_v44  ;;  %v2660_v44 = vld [vmem:[#allocation11 + $0x28] sm:$0xff]   ;;  %v2662_v46 = vld [vmem:[#allocation11 + $0x20] sm:$0xff]   ;;  %v2664_v48 = vld [vmem:[#allocation11 + $0x18] sm:$0xff]  }
 0x157   :  { %vm447_vm1 = vcmp.gt.f32.partialorder %v442_v47, 0.0  ;;  %v448_v49 = vmul.f32 0.01, %v442_v47 }
 0x159   :  { %v449_v50 = vsel %vm447_vm1, %v442_v47, %v448_v49  ;;  %v2663_v47 = vld [vmem:[#allocation11 + $0x58] sm:$0xff]   ;;  %v2665_v49 = vld [vmem:[#allocation11 + $0x50] sm:$0xff]  }
 0x15a   :  { %v466_v51 = vpack.c.bf16 %v449_v50, %v449_v50  ;;  %v2666_v50 = vld [vmem:[#allocation11 + $0x10] sm:$0xff]  }
 0x15c   :  { %2425 = vmatmul.mubr.bf16.vlgmr.msra.gmra.mxu0 %v466_v51  ;;  %v2667_v51 = vld [vmem:[#allocation11 + $0x48] sm:$0xff]  }
 0x15d   :  { %2476 = vmatprep.mubr.msk.bf16.mxu0 %vm2991_vm0, %v2990_v0  ;;  %2461 = vmatpush3.bf16.msra.mxu0 %v2647_v12 }
 0x15e   :  { %2462 = vmatprep.subr.bf16.mxu0 %v2990_v0 }
 0x161   :  { %2463 = vmatpush3.bf16.msra.mxu0 %v2648_v13 }
 0x162   :  { %2464 = vmatprep.subr.bf16.mxu0 %v2990_v0 }
 0x165   :  { %2465 = vmatpush3.bf16.msra.mxu0 %v2649_v14  ;;  %v2671_v14 = vld [vmem:[#allocation10 + $0xb8] sm:$0xff]  }
 0x166   :  { %2466 = vmatprep.subr.bf16.mxu0 %v2990_v0 }
 0x169   :  { %2467 = vmatpush3.bf16.msra.mxu0 %v2650_v15 }
 0x16a   :  { %2468 = vmatprep.subr.bf16.mxu0 %v2990_v0 }
 0x16d   :  { %2469 = vmatpush3.bf16.msra.mxu0 %v2651_v16 }
 0x16e   :  { %2470 = vmatprep.subr.bf16.mxu0 %v2990_v0 }
 0x171   :  { %2471 = vmatpush3.bf16.msra.mxu0 %v2652_v17 }
 0x172   :  { %2472 = vmatprep.subr.bf16.mxu0 %v2990_v0 }
 0x175   :  { %2473 = vmatpush3.bf16.msra.mxu0 %v2653_v30 }
 0x176   :  { %2474 = vmatprep.subr.bf16.mxu0 %v2990_v0 }
 0x179   :  { %2475 = vmatpush3.bf16.msra.mxu0 %v2654_v31 }
 0x17a   :  { %2286 = vmatprep.subr.bf16.mxu0 %v2655_v32 }
 0x21c   :  { %v554_v53 = vpop.f32.mrf.mxu0 }
 0x21d   :  { %v555_v54 = vadd.f32 %v2092_v52, %v554_v53  ;;  %v2668_v52 = vld [vmem:[#allocation11 + $0x8] sm:$0xff]   ;;  %v2669_v53 = vld [vmem:[#allocation11 + $0x40] sm:$0xff]  }
 0x21e   :  { %v2426_v55 = vpop.f32.mrf.mxu0 }
 0x21f   :  { %v562_v56 = vpack.c.bf16 %v555_v54, %v555_v54 }
 0x220   :  { %v557_v57 = vpop.f32.mrf.mxu0 }
 0x221   :  { %2429 = vmatpush3.bf16.msra.mxu1 %v562_v56  ;;  %v2113_v56 = vld [vmem:[#allocation16 + $0x3] ss:$0 sm:$0xff] }
 0x222   :  { %v2427_v60 = vpop.f32.mrf.mxu0  ;;  %2434 = vmatprep.subr.bf16.mxu1 %v2990_v0 }
 0x224   :  { %2431 = vmatmul.mubr.msk.bf16.vlgmr.msra.gmra.mxu1 %vm568_vm2, %v3123_v58 }
 0x225   :  { %2435 = vmatpush3.bf16.msra.mxu1 %v2639_v59  ;;  %2450 = vmatprep.mubr.msk.bf16.mxu1 %vm2991_vm0, %v2990_v0 }
 0x226   :  { %2436 = vmatprep.subr.bf16.mxu1 %v2990_v0 }
 0x229   :  { %2437 = vmatpush3.bf16.msra.mxu1 %v2640_v61 }
 0x22a   :  { %2438 = vmatprep.subr.bf16.mxu1 %v2990_v0 }
 0x22d   :  { %2439 = vmatpush3.bf16.msra.mxu1 %v2641_v62 }
 0x22e   :  { %2440 = vmatprep.subr.bf16.mxu1 %v2990_v0 }
 0x231   :  { %2441 = vmatpush3.bf16.msra.mxu1 %v2642_v63 }
 0x232   :  { %2442 = vmatprep.subr.bf16.mxu1 %v2990_v0 }
 0x235   :  { %2443 = vmatpush3.bf16.msra.mxu1 %v2643_v1 }
 0x236   :  { %2444 = vmatprep.subr.bf16.mxu1 %v2990_v0 }
 0x239   :  { %2445 = vmatpush3.bf16.msra.mxu1 %v2644_v2 }
 0x23a   :  { %2446 = vmatprep.subr.bf16.mxu1 %v2990_v0 }
 0x23d   :  { %2447 = vmatpush3.bf16.msra.mxu1 %v2645_v3 }
 0x23e   :  { %2448 = vmatprep.subr.bf16.mxu1 %v2990_v0 }
 0x241   :  { %2449 = vmatpush3.bf16.msra.mxu1 %v2646_v4 }
 0x242   :  { %2454 = vmatprep.subr.bf16.mxu1 %v2990_v0 }
 0x2e4   :  { %v606_v5 = vpop.f32.mrf.mxu1 }
 0x2e5   :  { %v613_v8 = vadd.f32 %v606_v5, %v555_v54 }
 0x2e6   :  { %v2432_v6 = vpop.f32.mrf.mxu1 }
 0x2e8   :  { %v609_v7 = vpop.f32.mrf.mxu1 }
 0x2e9   :  { %v614_v9 = vadd.f32 %v609_v7, %v555_v54  ;;  %v2670_v54 = vld [vmem:[#allocation11] sm:$0xff]  }
 0x2ea   :  { %v2433_v10 = vpop.f32.mrf.mxu1 }
 0x2eb   :  { %v631_v11 = vpack.c.bf16 %v614_v9, %v613_v8 }
 0x2ed   :  { %2451 = vmatmul.mubr.bf16.vlgmr.msra.gmra.mxu1 %v631_v11 }
 0x2ee   :  { %2456 = vmatprep.mubr.msk.bf16.mxu1 %vm2991_vm0, %v2990_v0 }
 0x3ad   :  { %v719_v19 = vpop.f32.mrf.mxu1 }
 0x3ae   :  { %v720_v20 = vadd.f32 %v2103_v18, %v719_v19 }
 0x3af   :  { %v2452_v21 = vpop.f32.mrf.mxu1 }
 0x3b0   :  { %v728_v23 = vmul.f32 0.01, %v720_v20  ;;  %vm726_vm3 = vcmp.gt.f32.partialorder %v720_v20, 0.0  ;;  %v2673_v21 = vld [vmem:[#allocation10 + $0xa8] sm:$0xff]  }
 0x3b1   :  { %v722_v22 = vpop.f32.mrf.mxu1 }
 0x3b2   :  { %v723_v24 = vadd.f32 %v2103_v18, %v722_v22  ;;  %v730_v27 = vsel %vm726_vm3, %v720_v20, %v728_v23  ;;  %v2672_v18 = vld [vmem:[#allocation10 + $0xb0] sm:$0xff]   ;;  %v2675_v22 = vld [vmem:[#allocation10 + $0x98] sm:$0xff]  }
 0x3b3   :  { %v2453_v25 = vpop.f32.mrf.mxu1  ;;  %v732_v55 = vrot.slane %v730_v27, 4  ;;  %v2676_v23 = vld [vmem:[#allocation10 + $0x90] sm:$0xff]  }
 0x3b4   :  { %vm727_vm4 = vcmp.gt.f32.partialorder %v723_v24, 0.0  ;;  %v729_v26 = vmul.f32 0.01, %v723_v24  ;;  %v2678_v25 = vld [vmem:[#allocation10 + $0x80] sm:$0xff]  }
 0x3b5   :  { %v733_v57 = vadd.f32 %v732_v55, %v730_v27 }
 0x3b6   :  { %v731_v28 = vsel %vm727_vm4, %v723_v24, %v729_v26  ;;  %v2677_v24 = vld [vmem:[#allocation10 + $0x88] sm:$0xff]  }
 0x3b7   :  { %v738_v29 = vpack.c.bf16 %v731_v28, %v730_v27  ;;  %v734_v62 = vrot.slane %v733_v57, 2 }
 0x3b9   :  { %2455 = vmatpush3.bf16.msra.mxu1 %v738_v29  ;;  %v735_v7 = vadd.f32 %v734_v62, %v733_v57 }
 0x3ba   :  { %2480 = vmatprep.subr.bf16.mxu1 %v2990_v0 }
 0x3bb   :  { %v736_v12 = vrot.slane %v735_v7, 1 }
 0x3bc   :  { %2457 = vmatmul.mubr.msk.bf16.vlgmr.msra.gmra.mxu1 %vm568_vm2, %v3123_v58 }
 0x3bd   :  { %2482 = vmatprep.mubr.msk.bf16.mxu1 %vm2991_vm0, %v2990_v0  ;;  %v737_v16 = vadd.f32 %v736_v12, %v735_v7  ;;  %v2693_v12 = vld [vmem:[#allocation11 + $0x120] sm:$0xff]  }
 0x3bf   :  { %v1122_v20 = vpack.c.bf16 %v737_v16, %v737_v16  ;;  %v2697_v16 = vld [vmem:[#allocation11 + $0x110] sm:$0xff]  }
 0x47c   :  { %v773_v33 = vpop.f32.mrf.mxu1 }
 0x47d   :  { %v780_v36 = vadd.f32 %v773_v33, %v730_v27  ;;  %v2679_v33 = vld [vmem:[#allocation11 + $0xb8] sm:$0xff]  }
 0x47e   :  { %v2458_v34 = vpop.f32.mrf.mxu1 }
 0x480   :  { %v776_v35 = vpop.f32.mrf.mxu1 }
 0x481   :  { %v781_v37 = vadd.f32 %v776_v35, %v731_v28 }
 0x482   :  { %v2459_v38 = vpop.f32.mrf.mxu1 }
 0x483   :  { %v799_v40 = vpack.c.bf16 %v781_v37, %v780_v36  ;;  %v2680_v38 = vld [vmem:[#allocation11 + $0xb0] sm:$0xff]  }
 0x485   :  { %2477 = vmatmul.mubr.bf16.vlgmr.msra.gmra.mxu0 %v799_v40  ;;  %v2681_v40 = vld [vmem:[#allocation11 + $0xa8] sm:$0xff]  }
 0x486   :  { %2287 = vmatpush3.bf16.msra.mxu0 %v2656_v39 }
 0x487   :  { %2288 = vmatprep.subr.bf16.mxu0 %v2657_v41  ;;  %v2682_v41 = vld [vmem:[#allocation11 + $0xa0] sm:$0xff]  }
 0x48a   :  { %2289 = vmatpush3.bf16.msra.mxu0 %v2658_v42  ;;  %v2683_v42 = vld [vmem:[#allocation11 + $0x98] sm:$0xff]  }
 0x48b   :  { %2290 = vmatprep.subr.bf16.mxu0 %v2659_v43  ;;  %v2684_v43 = vld [vmem:[#allocation11 + $0x90] sm:$0xff]  }
 0x48e   :  { %2291 = vmatpush3.bf16.msra.mxu0 %v2660_v44  ;;  %v2685_v44 = vld [vmem:[#allocation11 + $0x88] sm:$0xff]  }
 0x48f   :  { %2292 = vmatprep.subr.bf16.mxu0 %v2661_v45  ;;  %v2686_v45 = vld [vmem:[#allocation11 + $0x80] sm:$0xff]  }
 0x492   :  { %2293 = vmatpush3.bf16.msra.mxu0 %v2662_v46  ;;  %v2687_v46 = vld [vmem:[#allocation11 + $0x138] sm:$0xff]  }
 0x493   :  { %2294 = vmatprep.subr.bf16.mxu0 %v2663_v47  ;;  %v2703_v47 = vld [vmem:[#allocation13 + $0x38] sm:$0xff]  }
 0x496   :  { %2295 = vmatpush3.bf16.msra.mxu0 %v2664_v48  ;;  %v2704_v48 = vld [vmem:[#allocation13 + $0x30] sm:$0xff]  }
 0x497   :  { %2296 = vmatprep.subr.bf16.mxu0 %v2665_v49  ;;  %v2705_v49 = vld [vmem:[#allocation13 + $0x28] sm:$0xff]  }
 0x49a   :  { %2297 = vmatpush3.bf16.msra.mxu0 %v2666_v50  ;;  %v2706_v50 = vld [vmem:[#allocation13 + $0x20] sm:$0xff]  }
 0x49b   :  { %2298 = vmatprep.subr.bf16.mxu0 %v2667_v51  ;;  %v2707_v51 = vld [vmem:[#allocation13 + $0x18] sm:$0xff]  }
 0x49e   :  { %2299 = vmatpush3.bf16.msra.mxu0 %v2668_v52  ;;  %v2708_v52 = vld [vmem:[#allocation13 + $0x10] sm:$0xff]  }
 0x49f   :  { %2300 = vmatprep.subr.bf16.mxu0 %v2669_v53  ;;  %v2123_v53 = vld [vmem:[#allocation16 + $0x4] ss:$0 sm:$0xff] }
 0x4a2   :  { %2301 = vmatpush3.bf16.msra.mxu0 %v2670_v54 }
 0x4a3   :  { %2526 = vmatprep.subr.bf16.mxu0 %v2990_v0 }
 0x545   :  { %v887_v59 = vpop.f32.mrf.mxu0 }
 0x546   :  { %v888_v60 = vadd.f32 %v2113_v56, %v887_v59 }
 0x547   :  { %v2478_v61 = vpop.f32.mrf.mxu0 }
 0x548   :  { %vm894_vm5 = vcmp.gt.f32.partialorder %v888_v60, 0.0  ;;  %v896_v63 = vmul.f32 0.01, %v888_v60 }
 0x549   :  { %v890_v1 = vpop.f32.mrf.mxu0 }
 0x54a   :  { %v898_v2 = vsel %vm894_vm5, %v888_v60, %v896_v63  ;;  %v891_v3 = vadd.f32 %v2113_v56, %v890_v1 }
 0x54b   :  { %v900_v4 = vrot.slane %v898_v2, 4  ;;  %v2479_v5 = vpop.f32.mrf.mxu0 }
 0x54c   :  { %vm895_vm6 = vcmp.gt.f32.partialorder %v891_v3, 0.0  ;;  %v897_v6 = vmul.f32 0.01, %v891_v3 }
 0x54d   :  { %v901_v8 = vadd.f32 %v900_v4, %v898_v2 }
 0x54e   :  { %v899_v9 = vsel %vm895_vm6, %v891_v3, %v897_v6  ;;  %v2688_v6 = vld [vmem:[#allocation11 + $0xf8] sm:$0xff]  }
 0x54f   :  { %v906_v10 = vpack.c.bf16 %v899_v9, %v898_v2  ;;  %v902_v11 = vrot.slane %v901_v8, 2 }
 0x551   :  { %2481 = vmatpush3.bf16.msra.mxu1 %v906_v10  ;;  %v903_v13 = vadd.f32 %v902_v11, %v901_v8  ;;  %v2689_v8 = vld [vmem:[#allocation11 + $0x130] sm:$0xff]   ;;  %v2691_v10 = vld [vmem:[#allocation11 + $0x128] sm:$0xff]  }
 0x552   :  { %2486 = vmatprep.subr.bf16.mxu1 %v2990_v0  ;;  %v2692_v11 = vld [vmem:[#allocation11 + $0xe8] sm:$0xff]  }
 0x553   :  { %v904_v15 = vrot.slane %v903_v13, 1 }
 0x554   :  { %2483 = vmatmul.mubr.msk.bf16.vlgmr.msra.gmra.mxu1 %vm568_vm2, %v3123_v58  ;;  %v2674_v58 = vld [vmem:[#allocation10 + $0xa0] sm:$0xff]  }
 0x555   :  { %v905_v17 = vadd.f32 %v904_v15, %v903_v13  ;;  %2487 = vmatpush3.bf16.msra.mxu1 %v2671_v14  ;;  %2502 = vmatprep.mubr.msk.bf16.mxu1 %vm2991_vm0, %v2990_v0  ;;  %v2694_v13 = vld [vmem:[#allocation11 + $0xe0] sm:$0xff]   ;;  %v2695_v14 = vld [vmem:[#allocation11 + $0x118] sm:$0xff]  }
 0x556   :  { %2488 = vmatprep.subr.bf16.mxu1 %v2990_v0  ;;  %v2696_v15 = vld [vmem:[#allocation11 + $0xd8] sm:$0xff]  }
 0x557   :  { %v1123_v19 = vpack.c.bf16 %v905_v17, %v905_v17  ;;  %v2698_v17 = vld [vmem:[#allocation11 + $0xd0] sm:$0xff]  }
 0x559   :  { %1302 = vmatprep.mubr.bf16.mxu0 %v1123_v19  ;;  %2489 = vmatpush3.bf16.msra.mxu1 %v2672_v18  ;;  %v2699_v18 = vld [vmem:[#allocation11 + $0x108] sm:$0xff]  }
 0x55a   :  { %1303 = vmatmul.mubr.bf16.vlgmr.msra.gmra.mxu0 %v1122_v20  ;;  %2490 = vmatprep.subr.bf16.mxu1 %v2990_v0  ;;  %v2700_v19 = vld [vmem:[#allocation11 + $0xc8] sm:$0xff]   ;;  %v2701_v20 = vld [vmem:[#allocation11 + $0x100] sm:$0xff]  }
 0x55b   :  { %2542 = vmatprep.mubr.msk.bf16.mxu0 %vm2991_vm0, %v2990_v0  ;;  %2527 = vmatpush3.bf16.msra.mxu0 %v2703_v47  ;;  %v2720_v47 = vld [vmem:[#allocation13 + $0x70] sm:$0xff]  }
 0x55c   :  { %2528 = vmatprep.subr.bf16.mxu0 %v2990_v0 }
 0x55d   :  { %2491 = vmatpush3.bf16.msra.mxu1 %v2673_v21  ;;  %v2702_v21 = vld [vmem:[#allocation11 + $0xc0] sm:$0xff]  }
 0x55e   :  { %2492 = vmatprep.subr.bf16.mxu1 %v2990_v0 }
 0x55f   :  { %2529 = vmatpush3.bf16.msra.mxu0 %v2704_v48  ;;  %v2721_v48 = vld [vmem:[#allocation13 + $0x68] sm:$0xff]  }
 0x560   :  { %2530 = vmatprep.subr.bf16.mxu0 %v2990_v0 }
 0x561   :  { %2493 = vmatpush3.bf16.msra.mxu1 %v2674_v58  ;;  %v2709_v58 = vld [vmem:[#allocation13 + $0x8] sm:$0xff]  }
 0x562   :  { %2494 = vmatprep.subr.bf16.mxu1 %v2990_v0 }
 0x563   :  { %2531 = vmatpush3.bf16.msra.mxu0 %v2705_v49  ;;  %v2722_v49 = vld [vmem:[#allocation13 + $0x60] sm:$0xff]  }
 0x564   :  { %2532 = vmatprep.subr.bf16.mxu0 %v2990_v0 }
 0x565   :  { %2495 = vmatpush3.bf16.msra.mxu1 %v2675_v22  ;;  %v2710_v22 = vld [vmem:[#allocation13] sm:$0xff]  }
 0x566   :  { %2496 = vmatprep.subr.bf16.mxu1 %v2990_v0 }
 0x567   :  { %2533 = vmatpush3.bf16.msra.mxu0 %v2706_v50  ;;  %v2723_v50 = vld [vmem:[#allocation13 + $0x58] sm:$0xff]  }
 0x568   :  { %2534 = vmatprep.subr.bf16.mxu0 %v2990_v0 }
 0x569   :  { %2497 = vmatpush3.bf16.msra.mxu1 %v2676_v23  ;;  %v1125_v23 = vld [vmem:[#allocation16 + $0x5] sm:$0x1] }
 0x56a   :  { %2498 = vmatprep.subr.bf16.mxu1 %v2990_v0 }
 0x56b   :  { %2535 = vmatpush3.bf16.msra.mxu0 %v2707_v51  ;;  %v2724_v51 = vld [vmem:[#allocation13 + $0x50] sm:$0xff]  }
 0x56c   :  { %2536 = vmatprep.subr.bf16.mxu0 %v2990_v0 }
 0x56d   :  { %2499 = vmatpush3.bf16.msra.mxu1 %v2677_v24 }
 0x56e   :  { %2500 = vmatprep.subr.bf16.mxu1 %v2990_v0 }
 0x56f   :  { %2537 = vmatpush3.bf16.msra.mxu0 %v2708_v52  ;;  %v2725_v52 = vld [vmem:[#allocation13 + $0x48] sm:$0xff]  }
 0x570   :  { %2538 = vmatprep.subr.bf16.mxu0 %v2990_v0 }
 0x571   :  { %2501 = vmatpush3.bf16.msra.mxu1 %v2678_v25 }
 0x572   :  { %2506 = vmatprep.subr.bf16.mxu1 %v2990_v0 }
 0x573   :  { %2539 = vmatpush3.bf16.msra.mxu0 %v2709_v58 }
 0x574   :  { %2540 = vmatprep.subr.bf16.mxu0 %v2990_v0 }
 0x577   :  { %2541 = vmatpush3.bf16.msra.mxu0 %v2710_v22 }
 0x578   :  { %2546 = vmatprep.subr.bf16.mxu0 %v2990_v0 }
 0x614   :  { %v941_v26 = vpop.f32.mrf.mxu1 }
 0x615   :  { %v948_v29 = vadd.f32 %v941_v26, %v898_v2 }
 0x616   :  { %v2484_v27 = vpop.f32.mrf.mxu1 }
 0x618   :  { %v944_v28 = vpop.f32.mrf.mxu1 }
 0x619   :  { %v949_v30 = vadd.f32 %v944_v28, %v899_v9  ;;  %v2690_v9 = vld [vmem:[#allocation11 + $0xf0] sm:$0xff]  }
 0x61a   :  { %v2485_v31 = vpop.f32.mrf.mxu1  ;;  %v2302_v32 = vpop.f32.mrf.mxu0 }
 0x61b   :  { %v967_v34 = vpack.c.bf16 %v949_v30, %v948_v29  ;;  %v2711_v31 = vld [vmem:[#allocation11 + $0x178] sm:$0xff]  }
 0x61c   :  { %v2303_v35 = vpop.f32.mrf.mxu0 }
 0x61d   :  { %v3168_v36 = vadd.f32 %v2303_v35, %v2302_v32  ;;  %2503 = vmatmul.mubr.bf16.vlgmr.msra.gmra.mxu1 %v967_v34  ;;  %v2712_v34 = vld [vmem:[#allocation11 + $0x170] sm:$0xff]   ;;  %v2713_v35 = vld [vmem:[#allocation11 + $0x168] sm:$0xff]  }
 0x61e   :  { %v2305_v37 = vpop.f32.mrf.mxu0  ;;  %2507 = vmatpush3.bf16.msra.mxu1 %v2679_v33  ;;  %2522 = vmatprep.mubr.msk.bf16.mxu1 %vm2991_vm0, %v2990_v0 }
 0x61f   :  { %2508 = vmatprep.subr.bf16.mxu1 %v2990_v0  ;;  %v1305_v24 = vadd.f32 %v3168_v36, %v1125_v23  ;;  %v2714_v36 = vld [vmem:[#allocation11 + $0x160] sm:$0xff]   ;;  %v2715_v37 = vld [vmem:[#allocation11 + $0x158] sm:$0xff]  }
 0x620   :  { %v2306_v39 = vpop.f32.mrf.mxu0 }
 0x621   :  { %v2717_v39 = vld [vmem:[#allocation11 + $0x148] sm:$0xff]  }
 0x622   :  { %2509 = vmatpush3.bf16.msra.mxu1 %v2680_v38  ;;  %v2716_v38 = vld [vmem:[#allocation11 + $0x150] sm:$0xff]  }
 0x623   :  { %2510 = vmatprep.subr.bf16.mxu1 %v2990_v0 }
 0x626   :  { %2511 = vmatpush3.bf16.msra.mxu1 %v2681_v40 }
 0x627   :  { %2512 = vmatprep.subr.bf16.mxu1 %v2990_v0 }
 0x62a   :  { %2513 = vmatpush3.bf16.msra.mxu1 %v2682_v41  ;;  %v2718_v41 = vld [vmem:[#allocation11 + $0x140] sm:$0xff]  }
 0x62b   :  { %2514 = vmatprep.subr.bf16.mxu1 %v2990_v0 }
 0x62e   :  { %2515 = vmatpush3.bf16.msra.mxu1 %v2683_v42 }
 0x62f   :  { %2516 = vmatprep.subr.bf16.mxu1 %v2990_v0 }
 0x632   :  { %2517 = vmatpush3.bf16.msra.mxu1 %v2684_v43 }
 0x633   :  { %2518 = vmatprep.subr.bf16.mxu1 %v2990_v0 }
 0x636   :  { %2519 = vmatpush3.bf16.msra.mxu1 %v2685_v44 }
 0x637   :  { %2520 = vmatprep.subr.bf16.mxu1 %v2990_v0 }
 0x63a   :  { %2521 = vmatpush3.bf16.msra.mxu1 %v2686_v45 }
 0x63b   :  { %2326 = vmatprep.subr.bf16.mxu1 %v2687_v46  ;;  %v2719_v46 = vld [vmem:[#allocation13 + $0x78] sm:$0xff]  }
 0x6dd   :  { %v1055_v54 = vpop.f32.mrf.mxu1 }
 0x6de   :  { %v1056_v55 = vadd.f32 %v2123_v53, %v1055_v54  ;;  %v2727_v54 = vld [vmem:[#allocation14 + $0x78] sm:$0xff]  }
 0x6df   :  { %v2504_v56 = vpop.f32.mrf.mxu1 }
 0x6e0   :  { %vm1062_vm7 = vcmp.gt.f32.partialorder %v1056_v55, 0.0  ;;  %v1064_v57 = vmul.f32 0.01, %v1056_v55  ;;  %v2729_v56 = vld [vmem:[#allocation14 + $0x70] sm:$0xff]  }
 0x6e1   :  { %v1058_v59 = vpop.f32.mrf.mxu1 }
 0x6e2   :  { %v3185_v60 = vsel %vm1062_vm7, %v1056_v55, %v1064_v57  ;;  %v3187_v61 = vadd.f32 %v2123_v53, %v1058_v59  ;;  %v2726_v53 = vld [vmem:[#allocation13 + $0x40] sm:$0xff]   ;;  %v2728_v55 = vld [vmem:[#allocation14 + $0x38] sm:$0xff]   ;;  %v2730_v57 = vld [vmem:[#allocation14 + $0x30] sm:$0xff]  }
 0x6e3   :  { %v1068_v62 = vrot.slane %v3185_v60, 4  ;;  %v2505_v63 = vpop.f32.mrf.mxu1  ;;  %v2731_v59 = vld [vmem:[#allocation14 + $0x68] sm:$0xff]  }
 0x6e4   :  { %v2733_v63 = vld [vmem:[#allocation14 + $0x60] sm:$0xff]   ;;  %vm1063_vm11 = vcmp.gt.f32.partialorder %v3187_v61, 0.0 }
 0x6e5   :  { %v1069_v1 = vadd.f32 %v1068_v62, %v3185_v60  ;;  %v2732_v62 = vld [vmem:[#allocation14 + $0x28] sm:$0xff]  }
 0x6e7   :  { %v1070_v2 = vrot.slane %v1069_v1, 2 }
 0x6e9   :  { %v1071_v3 = vadd.f32 %v1070_v2, %v1069_v1  ;;  %v2734_v1 = vld [vmem:[#allocation14 + $0x20] sm:$0xff]   ;;  %v2735_v2 = vld [vmem:[#allocation14 + $0x58] sm:$0xff]  }
 0x6eb   :  { %v1072_v4 = vrot.slane %v1071_v3, 1 }
 0x6ed   :  { %v1073_v5 = vadd.f32 %v1072_v4, %v1071_v3  ;;  %v2737_v3 = vld [vmem:[#allocation14 + $0x50] sm:$0xff]  }
 0x6ee   :  { %v2738_v4 = vld [vmem:[#allocation14 + $0x10] sm:$0xff]  }
 0x6ef   :  { %v3191_v7 = vpack.c.bf16 %v1073_v5, %v1073_v5  ;;  %v2739_v5 = vld [vmem:[#allocation14 + $0x48] sm:$0xff]  }
 0x6f1   :  { %2523 = vmatmul.mubr.bf16.vlgmr.msra.gmra.mxu1 %v3191_v7 }
 0x6f2   :  { %2327 = vmatpush3.bf16.msra.mxu1 %v2688_v6  ;;  %1685 = vmatprep.mubr.bf16.mxu1 %v3191_v7  ;;  %v1370_v6 = vld [vmem:[#allocation16 + $0x6] sm:$0x1] }
 0x6f3   :  { %2328 = vmatprep.subr.bf16.mxu1 %v2689_v8  ;;  %v1845_v8 = vrot.slane %v3185_v60, 7  ;;  %v2740_v60 = vld [vmem:[#allocation14 + $0x8] sm:$0xff]  }
 0x6f6   :  { %2329 = vmatpush3.bf16.msra.mxu1 %v2690_v9 }
 0x6f7   :  { %2330 = vmatprep.subr.bf16.mxu1 %v2691_v10 }
 0x6fa   :  { %2331 = vmatpush3.bf16.msra.mxu1 %v2692_v11 }
 0x6fb   :  { %2332 = vmatprep.subr.bf16.mxu1 %v2693_v12 }
 0x6fe   :  { %2333 = vmatpush3.bf16.msra.mxu1 %v2694_v13 }
 0x6ff   :  { %2334 = vmatprep.subr.bf16.mxu1 %v2695_v14 }
 0x702   :  { %2335 = vmatpush3.bf16.msra.mxu1 %v2696_v15  ;;  %v1508_v15 = vld [vmem:[#allocation16 + $0x7] sm:$0x1] }
 0x703   :  { %2336 = vmatprep.subr.bf16.mxu1 %v2697_v16 }
 0x706   :  { %2337 = vmatpush3.bf16.msra.mxu1 %v2698_v17 }
 0x707   :  { %2338 = vmatprep.subr.bf16.mxu1 %v2699_v18 }
 0x70a   :  { %2339 = vmatpush3.bf16.msra.mxu1 %v2700_v19 }
 0x70b   :  { %2340 = vmatprep.subr.bf16.mxu1 %v2701_v20 }
 0x70e   :  { %2341 = vmatpush3.bf16.msra.mxu1 %v2702_v21 }
 0x70f   :  { %2566 = vmatprep.subr.bf16.mxu1 %v2990_v0 }
 0x711   :  { %1686 = vmatmul.mubr.bf16.vlgmr.msra.gmra.mxu1 %v3191_v7 }
 0x712   :  { %2582 = vmatprep.mubr.msk.bf16.mxu1 %vm2991_vm0, %v2990_v0  ;;  %2567 = vmatpush3.bf16.msra.mxu1 %v2719_v46 }
 0x713   :  { %2568 = vmatprep.subr.bf16.mxu1 %v2990_v0 }
 0x716   :  { %2569 = vmatpush3.bf16.msra.mxu1 %v2720_v47 }
 0x717   :  { %2570 = vmatprep.subr.bf16.mxu1 %v2990_v0 }
 0x71a   :  { %2571 = vmatpush3.bf16.msra.mxu1 %v2721_v48 }
 0x71b   :  { %2572 = vmatprep.subr.bf16.mxu1 %v2990_v0 }
 0x71e   :  { %2573 = vmatpush3.bf16.msra.mxu1 %v2722_v49 }
 0x71f   :  { %2574 = vmatprep.subr.bf16.mxu1 %v2990_v0 }
 0x722   :  { %2575 = vmatpush3.bf16.msra.mxu1 %v2723_v50 }
 0x723   :  { %2576 = vmatprep.subr.bf16.mxu1 %v2990_v0 }
 0x726   :  { %2577 = vmatpush3.bf16.msra.mxu1 %v2724_v51 }
 0x727   :  { %2578 = vmatprep.subr.bf16.mxu1 %v2990_v0 }
 0x72a   :  { %2579 = vmatpush3.bf16.msra.mxu1 %v2725_v52 }
 0x72b   :  { %2580 = vmatprep.subr.bf16.mxu1 %v2990_v0 }
 0x72e   :  { %2581 = vmatpush3.bf16.msra.mxu1 %v2726_v53 }
 0x7b1   :  { %v1344_v25 = vpop.f32.mrf.mxu1 }
 0x7b2   :  { %v1345_v26 = vadd.f32 %v1344_v25, %v1305_v24  ;;  %v2741_v24 = vld [vmem:[#allocation14 + $0x40] sm:$0xff]  }
 0x7b3   :  { %v2524_v27 = vpop.f32.mrf.mxu1  ;;  %v2742_v25 = vld [vmem:[#allocation14] sm:$0xff]  }
 0x7b4   :  { %vm1350_vm8 = vcmp.gt.f32.partialorder %v1345_v26, 0.0  ;;  %v1351_v28 = vmul.f32 0.01, %v1345_v26 }
 0x7b5   :  { %v1347_v29 = vpop.f32.mrf.mxu1 }
 0x7b6   :  { %v1352_v30 = vsel %vm1350_vm8, %v1345_v26, %v1351_v28  ;;  %v1065_v26 = vmul.f32 0.01, %v3187_v61  ;;  %v1754_v28 = vld [vmem:[#allocation16 + $0x8] sm:$0x1] }
 0x7b7   :  { %v1369_v32 = vpack.c.bf16 %v1352_v30, %v1352_v30  ;;  %v2525_v33 = vpop.f32.mrf.mxu1 }
 0x7b8   :  { %v1067_v27 = vsel %vm1063_vm11, %v3187_v61, %v1065_v26 }
 0x7b9   :  { %2543 = vmatmul.mubr.bf16.vlgmr.msra.gmra.mxu0 %v1369_v32  ;;  %v1846_v30 = vrot.slane %v1067_v27, 7 }
 0x7ba   :  { %2547 = vmatpush3.bf16.msra.mxu0 %v2711_v31  ;;  %2562 = vmatprep.mubr.msk.bf16.mxu0 %vm2991_vm0, %v2990_v0 }
 0x7bb   :  { %2548 = vmatprep.subr.bf16.mxu0 %v2990_v0 }
 0x7be   :  { %2549 = vmatpush3.bf16.msra.mxu0 %v2712_v34 }
 0x7bf   :  { %2550 = vmatprep.subr.bf16.mxu0 %v2990_v0 }
 0x7c2   :  { %2551 = vmatpush3.bf16.msra.mxu0 %v2713_v35 }
 0x7c3   :  { %2552 = vmatprep.subr.bf16.mxu0 %v2990_v0 }
 0x7c6   :  { %2553 = vmatpush3.bf16.msra.mxu0 %v2714_v36 }
 0x7c7   :  { %2554 = vmatprep.subr.bf16.mxu0 %v2990_v0 }
 0x7ca   :  { %2555 = vmatpush3.bf16.msra.mxu0 %v2715_v37 }
 0x7cb   :  { %2556 = vmatprep.subr.bf16.mxu0 %v2990_v0 }
 0x7ce   :  { %2557 = vmatpush3.bf16.msra.mxu0 %v2716_v38  ;;  %v2196_v38 = vld [vmem:[#allocation16 + $0x9] ss:$0 sm:$0xff] }
 0x7cf   :  { %2558 = vmatprep.subr.bf16.mxu0 %v2990_v0 }
 0x7d1   :  { %v2342_v40 = vpop.f32.mrf.mxu1 }
 0x7d2   :  { %2559 = vmatpush3.bf16.msra.mxu0 %v2717_v39 }
 0x7d3   :  { %v2343_v42 = vpop.f32.mrf.mxu1  ;;  %2560 = vmatprep.subr.bf16.mxu0 %v2990_v0  ;;  %v2736_v0 = vld [vmem:[#allocation14 + $0x18] sm:$0xff]  }
 0x7d4   :  { %v3211_v43 = vadd.f32 %v2343_v42, %v2342_v40 }
 0x7d5   :  { %v2345_v44 = vpop.f32.mrf.mxu1 }
 0x7d6   :  { %2561 = vmatpush3.bf16.msra.mxu0 %v2718_v41  ;;  %v1688_v16 = vadd.f32 %v3211_v43, %v1508_v15 }
 0x7d7   :  { %v2346_v45 = vpop.f32.mrf.mxu1  ;;  %2366 = vmatprep.subr.bf16.mxu0 %v2727_v54 }
 0x7d9   :  { %2563 = vmatmul.mubr.bf16.vlgmr.msra.gmra.mxu0 %v3191_v7 }
 0x7da   :  { %2367 = vmatpush3.bf16.msra.mxu0 %v2728_v55 }
 0x7db   :  { %2368 = vmatprep.subr.bf16.mxu0 %v2729_v56 }
 0x7de   :  { %2369 = vmatpush3.bf16.msra.mxu0 %v2730_v57 }
 0x7df   :  { %2370 = vmatprep.subr.bf16.mxu0 %v2731_v59 }
 0x7e2   :  { %2371 = vmatpush3.bf16.msra.mxu0 %v2732_v62 }
 0x7e3   :  { %2372 = vmatprep.subr.bf16.mxu0 %v2733_v63 }
 0x7e6   :  { %2373 = vmatpush3.bf16.msra.mxu0 %v2734_v1 }
 0x7e7   :  { %2374 = vmatprep.subr.bf16.mxu0 %v2735_v2 }
 0x7ea   :  { %2375 = vmatpush3.bf16.msra.mxu0 %v2736_v0 }
 0x7eb   :  { %2376 = vmatprep.subr.bf16.mxu0 %v2737_v3 }
 0x7ee   :  { %2377 = vmatpush3.bf16.msra.mxu0 %v2738_v4 }
 0x7ef   :  { %2378 = vmatprep.subr.bf16.mxu0 %v2739_v5 }
 0x7f2   :  { %2379 = vmatpush3.bf16.msra.mxu0 %v2740_v60 }
 0x7f3   :  { %2380 = vmatprep.subr.bf16.mxu0 %v2741_v24 }
 0x7f6   :  { %2381 = vmatpush3.bf16.msra.mxu0 %v2742_v25 }
 0x879   :  { %v1453_v7 = vpop.f32.mrf.mxu0 }
 0x87a   :  { %v1454_v9 = vadd.f32 %v1453_v7, %v1370_v6 }
 0x87b   :  { %v2544_v10 = vpop.f32.mrf.mxu0 }
 0x87c   :  { %v1850_v11 = vsel %vm1849_vm9, %v1454_v9, %v1845_v8 }
 0x87d   :  { %v1884_v12 = vpack.c.bf16 %v1845_v8, %v1850_v11  ;;  %v1456_v13 = vpop.f32.mrf.mxu0 }
 0x87f   :  { %v2545_v14 = vpop.f32.mrf.mxu0 }
 0x899   :  { %v1727_v17 = vpop.f32.mrf.mxu0 }
 0x89a   :  { %v1728_v18 = vadd.f32 %v1727_v17, %v1688_v16 }
 0x89b   :  { %v2564_v19 = vpop.f32.mrf.mxu0 }
 0x89c   :  { %vm1733_vm10 = vcmp.gt.f32.partialorder %v1728_v18, 0.0  ;;  %v1734_v20 = vmul.f32 0.01, %v1728_v18 }
 0x89d   :  { %v1730_v21 = vpop.f32.mrf.mxu0 }
 0x89e   :  { %v1735_v58 = vsel %vm1733_vm10, %v1728_v18, %v1734_v20 }
 0x89f   :  { %v1753_v22 = vpack.c.bf16 %v1735_v58, %v1735_v58  ;;  %v2565_v23 = vpop.f32.mrf.mxu0 }
 0x8a1   :  { %2583 = vmatmul.mubr.bf16.vlgmr.msra.gmra.mxu1 %v1753_v22 }
 0x961   :  { %v1837_v29 = vpop.f32.mrf.mxu1 }
 0x962   :  { %v1838_v31 = vadd.f32 %v1837_v29, %v1754_v28 }
 0x963   :  { %v2584_v32 = vpop.f32.mrf.mxu1 }
 0x964   :  { %v1851_v33 = vsel %vm1849_vm9, %v1838_v31, %v1846_v30 }
 0x965   :  { %v1840_v34 = vpop.f32.mrf.mxu1  ;;  %v1885_v35 = vpack.c.bf16 %v1846_v30, %v1851_v33 }
 0x967   :  { %v2585_v36 = vpop.f32.mrf.mxu1  ;;  %2019 = vmatprep.mubr.bf16.mxu0 %v1885_v35 }
 0x968   :  { %2020 = vmatmul.mubr.bf16.vlgmr.msra.gmra.mxu0 %v1884_v12 }
 0xa28   :  { %v2382_v37 = vpop.f32.mrf.mxu0 }
 0xa2a   :  { %v2383_v39 = vpop.f32.mrf.mxu0 }
 0xa2b   :  { %v2384_v40 = vadd.f32 %v2383_v39, %v2382_v37 }
 0xa2c   :  { %v2385_v41 = vpop.f32.mrf.mxu0 }
 0xa2d   :  { %v2022_v61 = vadd.f32 %v2384_v40, %v2196_v38 }
 0xa2e   :  { %v2386_v42 = vpop.f32.mrf.mxu0 }
 0xa2f   :  { %2028 = vst [vmem:[#allocation17] sm:$0x1] %v2022_v61  ;;  %2029 = vst [vmem:[#allocation18 - $0x1] sm:$0xfe] %v2022_v61  ;;  %v2387_v43 = vadd.f32 %v2386_v42, %v2385_v41 }
 0xa30   :  { %2934 = shalt.err (!%p2931_p7)
}
 0xa31   :  { %2040 = dma.vmem_to_hbm [thread:$0]  %s2038_s8, 16, %s3243_s9, [#allocation4]   ;;  %v2025_v44 = vadd.f32 %v2387_v43, %v2196_v38 }
 0xa32   :  { %s2943_s20 = scalar_lea.vmem %s2048_s17, 128  ;;  %p2948_p9 = scmp.lt.s32.totalorder %s2048_s17, %s2048_s17 }
 0xa33   :  { %2030 = vst [vmem:[#allocation18 + $0x7] sm:$0x1] %v2025_v44  ;;  %p2944_p8 = scmp.ne.s32.totalorder %s2048_s17, %s2943_s20  ;;  %p2949_p10 = scmp.lt.s32.totalorder %s2943_s20, %s2943_s20 }
 0xa35   :  { %p2950_p11 = por %p2949_p10, %p2948_p9 }
 0xa37   :  { %p2951_p12 = pnand %p2950_p11, %p2944_p8 }
 0xa39   :  { %2954 = shalt.err (!%p2951_p12)
}
 0xa3a   :  { %2050 = dma.vmem_to_hbm [thread:$0]  %s2048_s17, 128, %s3244_s10, [#allocation19]  }
 0xa3b   :  { %2973 = dma.done.wait [#allocation4], 16  }
 0xa3c   :  { %2974 = vsyncadd [#allocation4], 4294967280 }
 0xa3d   :  { %2975 = dma.done.wait [#allocation19], 128  }
 0xa3e   :  { %2976 = vsyncadd [#allocation19], 4294967168 }
 0xa3f   :  { %2057 = vsyncpa [#allocation3], 1 }
 0xa40   :  { %2058 = vsyncpa [#allocation6], 1 }
 0xa41   :  { %2059 = vsyncpa [#allocation9], 1 }
 0xa42   :  { %2060 = vsyncpa [#allocation12], 1 }
 0xa43   :  { %2061 = vsyncpa [#allocation15], 1 }
 0xa44   :  { %2062 = vsyncpa [#allocation4], 1 }
 0xa45   :  { %2063 = vsyncpa [#allocation19], 1 }

</bundles_post_ra>
